<compile_context>
chip_gen: v5e
topology: v5e:2x2
jax: 0.10.0
libtpu: 0.0.40
codegen_flags: <defaults>
</compile_context>

<pallas_src>
import functools

import jax
import jax.numpy as jnp
from jax.experimental import pallas as pl
from jax.experimental.pallas import tpu as pltpu

INPUT_DIM = 24
NUM_LAYER = 10
HIDDEN = 64
OUTPUT_DIM = 8

DEFAULT_TILE_B = 2048   # un-packed batch rows per grid step


def _round_up(n, m):
    return (n + m - 1) // m * m


def _device_kind():
    try:
        return jax.devices()[0].device_kind.lower()
    except Exception:
        return ""


def _pack_factor():
    """Batch-lane packing factor k = MXU width / HIDDEN.

    v4/v5 MXUs are 128 lanes wide -> k=2; v6e/v7x MXUs are 256 wide -> k=4.
    """
    kind = _device_kind()
    if "v4" in kind or "v5" in kind:
        return 2
    return 4


def _dimension_semantics(num_steps):
    # v7x has 2 TensorCores per chip: shard the batch grid across them when
    # there is an even number (>=2) of grid steps.  Harmless "parallel" else.
    if "v7" in _device_kind() and num_steps >= 2 and num_steps % 2 == 0:
        return (pltpu.CORE_PARALLEL,)
    return ("parallel",)


def mlp_kernel(x_ref, w_in_ref, b_in_ref, w_h_ref, b_h_ref, w_out_ref,
               b_out_ref, o_ref):
    """One batch tile of the lane-packed MLP; weights resident in VMEM.

    With packing factor k (k*HIDDEN == MXU width):
      x_ref     : (TBP, k*24)        f32   (cast to bf16 in-kernel)
      w_in_ref  : (k*24, k*64)       bf16  block-diagonal
      b_in_ref  : (1, k*64)          f32
      w_h_ref   : (10, k*64, k*64)   bf16  block-diagonal per layer
      b_h_ref   : (10, 1, k*64)      f32
      w_out_ref : (k*64, k*8)        bf16  block-diagonal
      b_out_ref : (1, k*8)           f32
      o_ref     : (TBP, k*8)         f32
    """
    # In-kernel bf16 cast: x streams from HBM as f32 (no wrapper cast pass).
    x = x_ref[...].astype(jnp.bfloat16)

    # Input layer: bf16 matmul on the full MXU width, f32 acc + bias + ReLU.
    h = jnp.dot(x, w_in_ref[...], preferred_element_type=jnp.float32)
    h = jnp.maximum(h + b_in_ref[...], 0.0)

    # Hidden stack: 10 x (Linear + ReLU).  fori_loop(unroll=True) keeps LLO
    # scheduling visibility while bounding live ranges of per-layer weights and
    # f32 activation slabs.
    # NOTE: bias/ReLU stay in f32 for exact parity with the f32 reference
    # (bf16 elementwise on v6e/v7x would halve VALU work at ~1 bf16-ulp cost).
    def layer(i, h):
        a = jnp.dot(h.astype(jnp.bfloat16), w_h_ref[i],
                    preferred_element_type=jnp.float32)
        return jnp.maximum(a + b_h_ref[i], 0.0)

    h = jax.lax.fori_loop(0, NUM_LAYER, layer, h, unroll=True)

    # Output projection (no activation).  Dropout == identity in eval mode.
    out = jnp.dot(h.astype(jnp.bfloat16), w_out_ref[...],
                  preferred_element_type=jnp.float32)
    # TODO(synk): last dim is k*8 (16/32) -> still a masked store; a full
    # 128-lane output slab would need an in-kernel sublane->lane relayout.
    o_ref[...] = (out + b_out_ref[...]).astype(o_ref.dtype)


def mlp_forward(x, packed, *, k, tile_b=DEFAULT_TILE_B):
    """x: (B, 24) f32; packed: dict from pack_params(params, k). Returns (B, 8) f32."""
    B = x.shape[0]
    k_in, k_hid, k_out = k * INPUT_DIM, k * HIDDEN, k * OUTPUT_DIM

    # Batch tile: multiple of 8*k so packed rows stay sublane-aligned.
    row_align = 8 * k
    tb = int(min(tile_b, _round_up(B, row_align)))
    tb = _round_up(tb, row_align)
    padded_b = _round_up(B, tb)

    if padded_b != B:
        x = jnp.pad(x, ((0, padded_b - B), (0, 0)))
    # Free row-major view: k consecutive batch rows -> one lane-packed row.
    xp = x.reshape(padded_b // k, k_in)

    tbp = tb // k
    num_steps = padded_b // tb
    grid = (num_steps,)

    # Advisory cost estimate (actual MXU work incl. the block-diagonal zeros).
    mac = INPUT_DIM * HIDDEN + NUM_LAYER * HIDDEN * HIDDEN + HIDDEN * OUTPUT_DIM
    flops = 2 * padded_b * k * mac
    weight_bytes = (2 * (k_in * k_hid + NUM_LAYER * k_hid * k_hid + k_hid * k_out)
                    + 4 * ((NUM_LAYER + 1) * k_hid + k_out))
    bytes_accessed = padded_b * (INPUT_DIM + OUTPUT_DIM) * 4 + weight_bytes

    # VMEM budget: double-buffered x/o tiles (lane-padded to 128), a few live
    # f32 activation slabs, packed weights (conservatively x2-buffered), plus
    # 2x headroom for compiler temporaries.
    in_lanes = _round_up(k_in, 128)
    hid_lanes = _round_up(k_hid, 128)
    out_lanes = _round_up(k_out, 128)
    act_bytes = (2 * tbp * in_lanes * 4      # x tiles (f32, double-buffered)
                 + 2 * tbp * out_lanes * 4   # out tiles
                 + 4 * tbp * hid_lanes * 4)  # live f32 h slabs + bf16 cast temps
    vmem_bytes = act_bytes + 2 * weight_bytes
    vmem_limit = int(min(max(2 * vmem_bytes, 16 * 1024 * 1024),
                         48 * 1024 * 1024))

    const2 = lambda i: (0, 0)
    const3 = lambda i: (0, 0, 0)

    out = pl.pallas_call(
        mlp_kernel,
        out_shape=jax.ShapeDtypeStruct((padded_b // k, k_out), jnp.float32),
        grid=grid,
        in_specs=[
            pl.BlockSpec((tbp, k_in), lambda i: (i, 0)),            # x tile
            # Constant index_maps: weights stay VMEM-resident across the grid.
            pl.BlockSpec((k_in, k_hid), const2),
            pl.BlockSpec((1, k_hid), const2),
            pl.BlockSpec((NUM_LAYER, k_hid, k_hid), const3),
            pl.BlockSpec((NUM_LAYER, 1, k_hid), const3),
            pl.BlockSpec((k_hid, k_out), const2),
            pl.BlockSpec((1, k_out), const2),
        ],
        out_specs=pl.BlockSpec((tbp, k_out), lambda i: (i, 0)),
        compiler_params=pltpu.CompilerParams(
            dimension_semantics=_dimension_semantics(num_steps),
            vmem_limit_bytes=vmem_limit),
        cost_estimate=pl.CostEstimate(
            flops=int(flops), transcendentals=0,
            bytes_accessed=int(bytes_accessed)),
    )(xp, packed["w_in"], packed["b_in"], packed["w_h"], packed["b_h"],
      packed["w_out"], packed["b_out"])

    # Free row-major view back to (padded_b, 8); drop padded rows.
    return out.reshape(padded_b, OUTPUT_DIM)[:B]


def init_params(key):
    """Deterministic init mimicking torch.nn.Linear's U(-1/sqrt(fan_in), +).

    Weights stored pre-transposed as (in, out) in bf16; biases in f32.
    """
    ks = jax.random.split(key, 6)

    def uniform(k, shape, fan_in, dtype):
        bound = 1.0 / jnp.sqrt(jnp.float32(fan_in))
        return jax.random.uniform(k, shape, jnp.float32, -bound, bound).astype(dtype)

    return {
        "w_in": uniform(ks[0], (INPUT_DIM, HIDDEN), INPUT_DIM, jnp.bfloat16),
        "b_in": uniform(ks[1], (1, HIDDEN), INPUT_DIM, jnp.float32),
        "w_h": uniform(ks[2], (NUM_LAYER, HIDDEN, HIDDEN), HIDDEN, jnp.bfloat16),
        "b_h": uniform(ks[3], (NUM_LAYER, 1, HIDDEN), HIDDEN, jnp.float32),
        "w_out": uniform(ks[4], (HIDDEN, OUTPUT_DIM), HIDDEN, jnp.bfloat16),
        "b_out": uniform(ks[5], (1, OUTPUT_DIM), HIDDEN, jnp.float32),
    }


def _block_diag(w, k):
    """(din, dout) -> (k*din, k*dout) with k copies of w on the block diagonal."""
    din, dout = w.shape
    out = jnp.zeros((k, din, k, dout), w.dtype)
    idx = jnp.arange(k)
    out = out.at[idx, :, idx, :].set(w[None])
    return out.reshape(k * din, k * dout)


def pack_params(params, k):
    """One-time lane packing: block-diagonal weights, lane-tiled biases."""
    return {
        "w_in": _block_diag(params["w_in"], k),
        "b_in": jnp.tile(params["b_in"], (1, k)),
        "w_h": jnp.stack([_block_diag(params["w_h"][i], k)
                          for i in range(NUM_LAYER)]),
        "b_h": jnp.tile(params["b_h"], (1, 1, k)),
        "w_out": _block_diag(params["w_out"], k),
        "b_out": jnp.tile(params["b_out"], (1, k)),
    }


def mlp_reference(x, params):
    """Pure-JAX reference with identical bf16-in / f32-accumulate math."""
    h = jnp.dot(x.astype(jnp.bfloat16), params["w_in"],
                preferred_element_type=jnp.float32) + params["b_in"]
    h = jnp.maximum(h, 0.0)
    for i in range(NUM_LAYER):
        h = jnp.dot(h.astype(jnp.bfloat16), params["w_h"][i],
                    preferred_element_type=jnp.float32) + params["b_h"][i]
        h = jnp.maximum(h, 0.0)
    return jnp.dot(h.astype(jnp.bfloat16), params["w_out"],
                   preferred_element_type=jnp.float32) + params["b_out"]


if __name__ == "__main__":
    key = jax.random.PRNGKey(0)
    pkey, xk1, xk2, xk3 = jax.random.split(key, 4)

    k = _pack_factor()
    params = init_params(pkey)
    packed = pack_params(params, k)

    fwd = jax.jit(functools.partial(mlp_forward, k=k))

    def check(xkey, batch):
        x = jax.random.normal(xkey, (batch, INPUT_DIM), jnp.float32)
        out = jax.block_until_ready(fwd(x, packed))
        ref = mlp_reference(x, params)
        assert out.shape == (batch, OUTPUT_DIM)
        err = float(jnp.max(jnp.abs(out - ref)))
        assert jnp.allclose(out, ref, atol=2e-3, rtol=2e-3), err

    check(xk1, 32)     # single grid step, no padding
    check(xk2, 100)    # ragged batch: padding + slice-back path
    check(xk3, 8192)   # multi-step batch grid, resident weights

    print("KERNEL_OK")
</pallas_src>

<mosaic_0001>
module attributes {stable_mosaic.version = 11 : i64} {
  func.func @mlp_kernel(%arg0: i32, %arg1: memref<8x96xf32, #tpu.memory_space<vmem>>, %arg2: memref<96x256xbf16, #tpu.memory_space<vmem>>, %arg3: memref<1x256xf32, #tpu.memory_space<vmem>>, %arg4: memref<10x256x256xbf16, #tpu.memory_space<vmem>>, %arg5: memref<10x1x256xf32, #tpu.memory_space<vmem>>, %arg6: memref<256x32xbf16, #tpu.memory_space<vmem>>, %arg7: memref<1x32xf32, #tpu.memory_space<vmem>>, %arg8: memref<8x32xf32, #tpu.memory_space<vmem>>) attributes {dimension_semantics = [#tpu.dimension_semantics<parallel>], iteration_bounds = array<i64: 1>, scalar_prefetch = 0 : i64, scratch_operands = 0 : i64, tpu.core_type = #tpu.core_type<tc>, window_params = [{transform_indices = @transform_0, window_bounds = array<i64: 8, 96>}, {pipeline_mode = #tpu.pipeline_mode<synchronous>, transform_indices = @transform_1, window_bounds = array<i64: 96, 256>}, {pipeline_mode = #tpu.pipeline_mode<synchronous>, transform_indices = @transform_2, window_bounds = array<i64: 1, 256>}, {pipeline_mode = #tpu.pipeline_mode<synchronous>, transform_indices = @transform_3, window_bounds = array<i64: 10, 256, 256>}, {pipeline_mode = #tpu.pipeline_mode<synchronous>, transform_indices = @transform_4, window_bounds = array<i64: 10, 1, 256>}, {pipeline_mode = #tpu.pipeline_mode<synchronous>, transform_indices = @transform_5, window_bounds = array<i64: 256, 32>}, {pipeline_mode = #tpu.pipeline_mode<synchronous>, transform_indices = @transform_6, window_bounds = array<i64: 1, 32>}, {transform_indices = @transform_7, window_bounds = array<i64: 8, 32>}]} {
    %c0 = arith.constant 0 : index
    %c0_0 = arith.constant 0 : index
    %0 = vector.load %arg1[%c0, %c0_0] : memref<8x96xf32, #tpu.memory_space<vmem>>, vector<8x96xf32>
    %1 = arith.truncf %0 : vector<8x96xf32> to vector<8x96xbf16>
    %c0_1 = arith.constant 0 : index
    %c0_2 = arith.constant 0 : index
    %2 = vector.load %arg2[%c0_1, %c0_2] : memref<96x256xbf16, #tpu.memory_space<vmem>>, vector<96x256xbf16>
    %cst = arith.constant dense<0.000000e+00> : vector<8x256xf32>
    %3 = tpu.matmul %1, %2, %cst {dimension_numbers = #tpu.dot_dimension_numbers<[1], [0], [0], [1], [0, 0, 1, 1], [], []>} : vector<8x96xbf16>, vector<96x256xbf16>, vector<8x256xf32> -> vector<8x256xf32>
    %c0_3 = arith.constant 0 : index
    %c0_4 = arith.constant 0 : index
    %4 = vector.load %arg3[%c0_3, %c0_4] : memref<1x256xf32, #tpu.memory_space<vmem>>, vector<1x256xf32>
    %5 = vector.broadcast %4 : vector<1x256xf32> to vector<8x256xf32>
    %6 = arith.addf %3, %5 : vector<8x256xf32>
    %cst_5 = arith.constant 0.000000e+00 : f32
    %7 = vector.broadcast %cst_5 : f32 to vector<8x256xf32>
    %8 = arith.maximumf %6, %7 : vector<8x256xf32>
    %c0_i32 = arith.constant 0 : i32
    %9 = arith.truncf %8 : vector<8x256xf32> to vector<8x256xbf16>
    %10 = arith.index_cast %c0_i32 : i32 to index
    %c0_6 = arith.constant 0 : index
    %c0_7 = arith.constant 0 : index
    %11 = vector.load %arg4[%10, %c0_6, %c0_7] : memref<10x256x256xbf16, #tpu.memory_space<vmem>>, vector<1x256x256xbf16>
    %12 = vector.shape_cast %11 : vector<1x256x256xbf16> to vector<256x256xbf16>
    %cst_8 = arith.constant dense<0.000000e+00> : vector<8x256xf32>
    %13 = tpu.matmul %9, %12, %cst_8 {dimension_numbers = #tpu.dot_dimension_numbers<[1], [0], [0], [1], [0, 0, 1, 1], [], []>} : vector<8x256xbf16>, vector<256x256xbf16>, vector<8x256xf32> -> vector<8x256xf32>
    %14 = arith.index_cast %c0_i32 : i32 to index
    %c0_9 = arith.constant 0 : index
    %c0_10 = arith.constant 0 : index
    %15 = vector.load %arg5[%14, %c0_9, %c0_10] : memref<10x1x256xf32, #tpu.memory_space<vmem>>, vector<1x1x256xf32>
    %16 = vector.shape_cast %15 : vector<1x1x256xf32> to vector<1x256xf32>
    %17 = vector.broadcast %16 : vector<1x256xf32> to vector<8x256xf32>
    %18 = arith.addf %13, %17 : vector<8x256xf32>
    %cst_11 = arith.constant 0.000000e+00 : f32
    %19 = vector.broadcast %cst_11 : f32 to vector<8x256xf32>
    %20 = arith.maximumf %18, %19 : vector<8x256xf32>
    %c1_i32 = arith.constant 1 : i32
    %21 = arith.truncf %20 : vector<8x256xf32> to vector<8x256xbf16>
    %22 = arith.index_cast %c1_i32 : i32 to index
    %c0_12 = arith.constant 0 : index
    %c0_13 = arith.constant 0 : index
    %23 = vector.load %arg4[%22, %c0_12, %c0_13] : memref<10x256x256xbf16, #tpu.memory_space<vmem>>, vector<1x256x256xbf16>
    %24 = vector.shape_cast %23 : vector<1x256x256xbf16> to vector<256x256xbf16>
    %cst_14 = arith.constant dense<0.000000e+00> : vector<8x256xf32>
    %25 = tpu.matmul %21, %24, %cst_14 {dimension_numbers = #tpu.dot_dimension_numbers<[1], [0], [0], [1], [0, 0, 1, 1], [], []>} : vector<8x256xbf16>, vector<256x256xbf16>, vector<8x256xf32> -> vector<8x256xf32>
    %26 = arith.index_cast %c1_i32 : i32 to index
    %c0_15 = arith.constant 0 : index
    %c0_16 = arith.constant 0 : index
    %27 = vector.load %arg5[%26, %c0_15, %c0_16] : memref<10x1x256xf32, #tpu.memory_space<vmem>>, vector<1x1x256xf32>
    %28 = vector.shape_cast %27 : vector<1x1x256xf32> to vector<1x256xf32>
    %29 = vector.broadcast %28 : vector<1x256xf32> to vector<8x256xf32>
    %30 = arith.addf %25, %29 : vector<8x256xf32>
    %cst_17 = arith.constant 0.000000e+00 : f32
    %31 = vector.broadcast %cst_17 : f32 to vector<8x256xf32>
    %32 = arith.maximumf %30, %31 : vector<8x256xf32>
    %c2_i32 = arith.constant 2 : i32
    %33 = arith.truncf %32 : vector<8x256xf32> to vector<8x256xbf16>
    %34 = arith.index_cast %c2_i32 : i32 to index
    %c0_18 = arith.constant 0 : index
    %c0_19 = arith.constant 0 : index
    %35 = vector.load %arg4[%34, %c0_18, %c0_19] : memref<10x256x256xbf16, #tpu.memory_space<vmem>>, vector<1x256x256xbf16>
    %36 = vector.shape_cast %35 : vector<1x256x256xbf16> to vector<256x256xbf16>
    %cst_20 = arith.constant dense<0.000000e+00> : vector<8x256xf32>
    %37 = tpu.matmul %33, %36, %cst_20 {dimension_numbers = #tpu.dot_dimension_numbers<[1], [0], [0], [1], [0, 0, 1, 1], [], []>} : vector<8x256xbf16>, vector<256x256xbf16>, vector<8x256xf32> -> vector<8x256xf32>
    %38 = arith.index_cast %c2_i32 : i32 to index
    %c0_21 = arith.constant 0 : index
    %c0_22 = arith.constant 0 : index
    %39 = vector.load %arg5[%38, %c0_21, %c0_22] : memref<10x1x256xf32, #tpu.memory_space<vmem>>, vector<1x1x256xf32>
    %40 = vector.shape_cast %39 : vector<1x1x256xf32> to vector<1x256xf32>
    %41 = vector.broadcast %40 : vector<1x256xf32> to vector<8x256xf32>
    %42 = arith.addf %37, %41 : vector<8x256xf32>
    %cst_23 = arith.constant 0.000000e+00 : f32
    %43 = vector.broadcast %cst_23 : f32 to vector<8x256xf32>
    %44 = arith.maximumf %42, %43 : vector<8x256xf32>
    %c3_i32 = arith.constant 3 : i32
    %45 = arith.truncf %44 : vector<8x256xf32> to vector<8x256xbf16>
    %46 = arith.index_cast %c3_i32 : i32 to index
    %c0_24 = arith.constant 0 : index
    %c0_25 = arith.constant 0 : index
    %47 = vector.load %arg4[%46, %c0_24, %c0_25] : memref<10x256x256xbf16, #tpu.memory_space<vmem>>, vector<1x256x256xbf16>
    %48 = vector.shape_cast %47 : vector<1x256x256xbf16> to vector<256x256xbf16>
    %cst_26 = arith.constant dense<0.000000e+00> : vector<8x256xf32>
    %49 = tpu.matmul %45, %48, %cst_26 {dimension_numbers = #tpu.dot_dimension_numbers<[1], [0], [0], [1], [0, 0, 1, 1], [], []>} : vector<8x256xbf16>, vector<256x256xbf16>, vector<8x256xf32> -> vector<8x256xf32>
    %50 = arith.index_cast %c3_i32 : i32 to index
    %c0_27 = arith.constant 0 : index
    %c0_28 = arith.constant 0 : index
    %51 = vector.load %arg5[%50, %c0_27, %c0_28] : memref<10x1x256xf32, #tpu.memory_space<vmem>>, vector<1x1x256xf32>
    %52 = vector.shape_cast %51 : vector<1x1x256xf32> to vector<1x256xf32>
    %53 = vector.broadcast %52 : vector<1x256xf32> to vector<8x256xf32>
    %54 = arith.addf %49, %53 : vector<8x256xf32>
    %cst_29 = arith.constant 0.000000e+00 : f32
    %55 = vector.broadcast %cst_29 : f32 to vector<8x256xf32>
    %56 = arith.maximumf %54, %55 : vector<8x256xf32>
    %c4_i32 = arith.constant 4 : i32
    %57 = arith.truncf %56 : vector<8x256xf32> to vector<8x256xbf16>
    %58 = arith.index_cast %c4_i32 : i32 to index
    %c0_30 = arith.constant 0 : index
    %c0_31 = arith.constant 0 : index
    %59 = vector.load %arg4[%58, %c0_30, %c0_31] : memref<10x256x256xbf16, #tpu.memory_space<vmem>>, vector<1x256x256xbf16>
    %60 = vector.shape_cast %59 : vector<1x256x256xbf16> to vector<256x256xbf16>
    %cst_32 = arith.constant dense<0.000000e+00> : vector<8x256xf32>
    %61 = tpu.matmul %57, %60, %cst_32 {dimension_numbers = #tpu.dot_dimension_numbers<[1], [0], [0], [1], [0, 0, 1, 1], [], []>} : vector<8x256xbf16>, vector<256x256xbf16>, vector<8x256xf32> -> vector<8x256xf32>
    %62 = arith.index_cast %c4_i32 : i32 to index
    %c0_33 = arith.constant 0 : index
    %c0_34 = arith.constant 0 : index
    %63 = vector.load %arg5[%62, %c0_33, %c0_34] : memref<10x1x256xf32, #tpu.memory_space<vmem>>, vector<1x1x256xf32>
    %64 = vector.shape_cast %63 : vector<1x1x256xf32> to vector<1x256xf32>
    %65 = vector.broadcast %64 : vector<1x256xf32> to vector<8x256xf32>
    %66 = arith.addf %61, %65 : vector<8x256xf32>
    %cst_35 = arith.constant 0.000000e+00 : f32
    %67 = vector.broadcast %cst_35 : f32 to vector<8x256xf32>
    %68 = arith.maximumf %66, %67 : vector<8x256xf32>
    %c5_i32 = arith.constant 5 : i32
    %69 = arith.truncf %68 : vector<8x256xf32> to vector<8x256xbf16>
    %70 = arith.index_cast %c5_i32 : i32 to index
    %c0_36 = arith.constant 0 : index
    %c0_37 = arith.constant 0 : index
    %71 = vector.load %arg4[%70, %c0_36, %c0_37] : memref<10x256x256xbf16, #tpu.memory_space<vmem>>, vector<1x256x256xbf16>
    %72 = vector.shape_cast %71 : vector<1x256x256xbf16> to vector<256x256xbf16>
    %cst_38 = arith.constant dense<0.000000e+00> : vector<8x256xf32>
    %73 = tpu.matmul %69, %72, %cst_38 {dimension_numbers = #tpu.dot_dimension_numbers<[1], [0], [0], [1], [0, 0, 1, 1], [], []>} : vector<8x256xbf16>, vector<256x256xbf16>, vector<8x256xf32> -> vector<8x256xf32>
    %74 = arith.index_cast %c5_i32 : i32 to index
    %c0_39 = arith.constant 0 : index
    %c0_40 = arith.constant 0 : index
    %75 = vector.load %arg5[%74, %c0_39, %c0_40] : memref<10x1x256xf32, #tpu.memory_space<vmem>>, vector<1x1x256xf32>
    %76 = vector.shape_cast %75 : vector<1x1x256xf32> to vector<1x256xf32>
    %77 = vector.broadcast %76 : vector<1x256xf32> to vector<8x256xf32>
    %78 = arith.addf %73, %77 : vector<8x256xf32>
    %cst_41 = arith.constant 0.000000e+00 : f32
    %79 = vector.broadcast %cst_41 : f32 to vector<8x256xf32>
    %80 = arith.maximumf %78, %79 : vector<8x256xf32>
    %c6_i32 = arith.constant 6 : i32
    %81 = arith.truncf %80 : vector<8x256xf32> to vector<8x256xbf16>
    %82 = arith.index_cast %c6_i32 : i32 to index
    %c0_42 = arith.constant 0 : index
    %c0_43 = arith.constant 0 : index
    %83 = vector.load %arg4[%82, %c0_42, %c0_43] : memref<10x256x256xbf16, #tpu.memory_space<vmem>>, vector<1x256x256xbf16>
    %84 = vector.shape_cast %83 : vector<1x256x256xbf16> to vector<256x256xbf16>
    %cst_44 = arith.constant dense<0.000000e+00> : vector<8x256xf32>
    %85 = tpu.matmul %81, %84, %cst_44 {dimension_numbers = #tpu.dot_dimension_numbers<[1], [0], [0], [1], [0, 0, 1, 1], [], []>} : vector<8x256xbf16>, vector<256x256xbf16>, vector<8x256xf32> -> vector<8x256xf32>
    %86 = arith.index_cast %c6_i32 : i32 to index
    %c0_45 = arith.constant 0 : index
    %c0_46 = arith.constant 0 : index
    %87 = vector.load %arg5[%86, %c0_45, %c0_46] : memref<10x1x256xf32, #tpu.memory_space<vmem>>, vector<1x1x256xf32>
    %88 = vector.shape_cast %87 : vector<1x1x256xf32> to vector<1x256xf32>
    %89 = vector.broadcast %88 : vector<1x256xf32> to vector<8x256xf32>
    %90 = arith.addf %85, %89 : vector<8x256xf32>
    %cst_47 = arith.constant 0.000000e+00 : f32
    %91 = vector.broadcast %cst_47 : f32 to vector<8x256xf32>
    %92 = arith.maximumf %90, %91 : vector<8x256xf32>
    %c7_i32 = arith.constant 7 : i32
    %93 = arith.truncf %92 : vector<8x256xf32> to vector<8x256xbf16>
    %94 = arith.index_cast %c7_i32 : i32 to index
    %c0_48 = arith.constant 0 : index
    %c0_49 = arith.constant 0 : index
    %95 = vector.load %arg4[%94, %c0_48, %c0_49] : memref<10x256x256xbf16, #tpu.memory_space<vmem>>, vector<1x256x256xbf16>
    %96 = vector.shape_cast %95 : vector<1x256x256xbf16> to vector<256x256xbf16>
    %cst_50 = arith.constant dense<0.000000e+00> : vector<8x256xf32>
    %97 = tpu.matmul %93, %96, %cst_50 {dimension_numbers = #tpu.dot_dimension_numbers<[1], [0], [0], [1], [0, 0, 1, 1], [], []>} : vector<8x256xbf16>, vector<256x256xbf16>, vector<8x256xf32> -> vector<8x256xf32>
    %98 = arith.index_cast %c7_i32 : i32 to index
    %c0_51 = arith.constant 0 : index
    %c0_52 = arith.constant 0 : index
    %99 = vector.load %arg5[%98, %c0_51, %c0_52] : memref<10x1x256xf32, #tpu.memory_space<vmem>>, vector<1x1x256xf32>
    %100 = vector.shape_cast %99 : vector<1x1x256xf32> to vector<1x256xf32>
    %101 = vector.broadcast %100 : vector<1x256xf32> to vector<8x256xf32>
    %102 = arith.addf %97, %101 : vector<8x256xf32>
    %cst_53 = arith.constant 0.000000e+00 : f32
    %103 = vector.broadcast %cst_53 : f32 to vector<8x256xf32>
    %104 = arith.maximumf %102, %103 : vector<8x256xf32>
    %c8_i32 = arith.constant 8 : i32
    %105 = arith.truncf %104 : vector<8x256xf32> to vector<8x256xbf16>
    %106 = arith.index_cast %c8_i32 : i32 to index
    %c0_54 = arith.constant 0 : index
    %c0_55 = arith.constant 0 : index
    %107 = vector.load %arg4[%106, %c0_54, %c0_55] : memref<10x256x256xbf16, #tpu.memory_space<vmem>>, vector<1x256x256xbf16>
    %108 = vector.shape_cast %107 : vector<1x256x256xbf16> to vector<256x256xbf16>
    %cst_56 = arith.constant dense<0.000000e+00> : vector<8x256xf32>
    %109 = tpu.matmul %105, %108, %cst_56 {dimension_numbers = #tpu.dot_dimension_numbers<[1], [0], [0], [1], [0, 0, 1, 1], [], []>} : vector<8x256xbf16>, vector<256x256xbf16>, vector<8x256xf32> -> vector<8x256xf32>
    %110 = arith.index_cast %c8_i32 : i32 to index
    %c0_57 = arith.constant 0 : index
    %c0_58 = arith.constant 0 : index
    %111 = vector.load %arg5[%110, %c0_57, %c0_58] : memref<10x1x256xf32, #tpu.memory_space<vmem>>, vector<1x1x256xf32>
    %112 = vector.shape_cast %111 : vector<1x1x256xf32> to vector<1x256xf32>
    %113 = vector.broadcast %112 : vector<1x256xf32> to vector<8x256xf32>
    %114 = arith.addf %109, %113 : vector<8x256xf32>
    %cst_59 = arith.constant 0.000000e+00 : f32
    %115 = vector.broadcast %cst_59 : f32 to vector<8x256xf32>
    %116 = arith.maximumf %114, %115 : vector<8x256xf32>
    %c9_i32 = arith.constant 9 : i32
    %117 = arith.truncf %116 : vector<8x256xf32> to vector<8x256xbf16>
    %118 = arith.index_cast %c9_i32 : i32 to index
    %c0_60 = arith.constant 0 : index
    %c0_61 = arith.constant 0 : index
    %119 = vector.load %arg4[%118, %c0_60, %c0_61] : memref<10x256x256xbf16, #tpu.memory_space<vmem>>, vector<1x256x256xbf16>
    %120 = vector.shape_cast %119 : vector<1x256x256xbf16> to vector<256x256xbf16>
    %cst_62 = arith.constant dense<0.000000e+00> : vector<8x256xf32>
    %121 = tpu.matmul %117, %120, %cst_62 {dimension_numbers = #tpu.dot_dimension_numbers<[1], [0], [0], [1], [0, 0, 1, 1], [], []>} : vector<8x256xbf16>, vector<256x256xbf16>, vector<8x256xf32> -> vector<8x256xf32>
    %122 = arith.index_cast %c9_i32 : i32 to index
    %c0_63 = arith.constant 0 : index
    %c0_64 = arith.constant 0 : index
    %123 = vector.load %arg5[%122, %c0_63, %c0_64] : memref<10x1x256xf32, #tpu.memory_space<vmem>>, vector<1x1x256xf32>
    %124 = vector.shape_cast %123 : vector<1x1x256xf32> to vector<1x256xf32>
    %125 = vector.broadcast %124 : vector<1x256xf32> to vector<8x256xf32>
    %126 = arith.addf %121, %125 : vector<8x256xf32>
    %cst_65 = arith.constant 0.000000e+00 : f32
    %127 = vector.broadcast %cst_65 : f32 to vector<8x256xf32>
    %128 = arith.maximumf %126, %127 : vector<8x256xf32>
    %c10_i32 = arith.constant 10 : i32
    %129 = arith.truncf %128 : vector<8x256xf32> to vector<8x256xbf16>
    %c0_66 = arith.constant 0 : index
    %c0_67 = arith.constant 0 : index
    %130 = vector.load %arg6[%c0_66, %c0_67] : memref<256x32xbf16, #tpu.memory_space<vmem>>, vector<256x32xbf16>
    %cst_68 = arith.constant dense<0.000000e+00> : vector<8x32xf32>
    %131 = tpu.matmul %129, %130, %cst_68 {dimension_numbers = #tpu.dot_dimension_numbers<[1], [0], [0], [1], [0, 0, 1, 1], [], []>} : vector<8x256xbf16>, vector<256x32xbf16>, vector<8x32xf32> -> vector<8x32xf32>
    %c0_69 = arith.constant 0 : index
    %c0_70 = arith.constant 0 : index
    %132 = vector.load %arg7[%c0_69, %c0_70] : memref<1x32xf32, #tpu.memory_space<vmem>>, vector<1x32xf32>
    %133 = vector.broadcast %132 : vector<1x32xf32> to vector<8x32xf32>
    %134 = arith.addf %131, %133 : vector<8x32xf32>
    %c0_71 = arith.constant 0 : index
    %c0_72 = arith.constant 0 : index
    %135 = vector.load %arg8[%c0_71, %c0_72] : memref<8x32xf32, #tpu.memory_space<vmem>>, vector<8x32xf32>
    tpu.vector_store %arg8[%c0_71, %c0_72], %134 {strides = array<i32>} : memref<8x32xf32, #tpu.memory_space<vmem>>, vector<8x32xf32>,
    return
  }
  func.func @transform_0(%arg0: i32) -> (i32, i32) {
    %c0_i32 = arith.constant 0 : i32
    %c0_i32_0 = arith.constant 0 : i32
    return %arg0, %c0_i32 : i32, i32
  }
  func.func @transform_1(%arg0: i32) -> (i32, i32) {
    %c0_i32 = arith.constant 0 : i32
    %c0_i32_0 = arith.constant 0 : i32
    %c0_i32_1 = arith.constant 0 : i32
    return %c0_i32, %c0_i32_0 : i32, i32
  }
  func.func @transform_2(%arg0: i32) -> (i32, i32) {
    %c0_i32 = arith.constant 0 : i32
    %c0_i32_0 = arith.constant 0 : i32
    %c0_i32_1 = arith.constant 0 : i32
    return %c0_i32, %c0_i32_0 : i32, i32
  }
  func.func @transform_3(%arg0: i32) -> (i32, i32, i32) {
    %c0_i32 = arith.constant 0 : i32
    %c0_i32_0 = arith.constant 0 : i32
    %c0_i32_1 = arith.constant 0 : i32
    %c0_i32_2 = arith.constant 0 : i32
    return %c0_i32, %c0_i32_0, %c0_i32_1 : i32, i32, i32
  }
  func.func @transform_4(%arg0: i32) -> (i32, i32, i32) {
    %c0_i32 = arith.constant 0 : i32
    %c0_i32_0 = arith.constant 0 : i32
    %c0_i32_1 = arith.constant 0 : i32
    %c0_i32_2 = arith.constant 0 : i32
    return %c0_i32, %c0_i32_0, %c0_i32_1 : i32, i32, i32
  }
  func.func @transform_5(%arg0: i32) -> (i32, i32) {
    %c0_i32 = arith.constant 0 : i32
    %c0_i32_0 = arith.constant 0 : i32
    %c0_i32_1 = arith.constant 0 : i32
    return %c0_i32, %c0_i32_0 : i32, i32
  }
  func.func @transform_6(%arg0: i32) -> (i32, i32) {
    %c0_i32 = arith.constant 0 : i32
    %c0_i32_0 = arith.constant 0 : i32
    %c0_i32_1 = arith.constant 0 : i32
    return %c0_i32, %c0_i32_0 : i32, i32
  }
  func.func @transform_7(%arg0: i32) -> (i32, i32) {
    %c0_i32 = arith.constant 0 : i32
    %c0_i32_0 = arith.constant 0 : i32
    return %arg0, %c0_i32 : i32, i32
  }
}

</mosaic_0001>

<bundles_post_ra>
// kernel: mlp_forward.1
= control target key start
LH: loop header
LB: loop body
LE: loop exit
PB: predicated region body
PF: predicated region fallthrough
CT: control target
= control target key end

     0   :  { %12 = vsyncpa [#allocation3], 0  ;;  %s4938_s0 = inlined_call_operand.vmem [shape: f32[8,96], index: 0, kind: input, shape index: {}]   ;;  %s4939_s1 = inlined_call_operand.hbm [shape: bf16[96,256], index: 1, kind: input, shape index: {}]   ;;  %s4940_s2 = inlined_call_operand.hbm [shape: f32[1,256], index: 2, kind: input, shape index: {}]   ;;  %s4941_s3 = inlined_call_operand.hbm [shape: bf16[10,256,256], index: 3, kind: input, shape index: {}]   ;;  %s4942_s4 = inlined_call_operand.hbm [shape: f32[10,1,256], index: 4, kind: input, shape index: {}]   ;;  %s4943_s5 = inlined_call_operand.vmem [shape: bf16[256,32], index: 5, kind: input, shape index: {}]   ;;  %s4944_s6 = inlined_call_operand.hbm [shape: f32[1,32], index: 6, kind: input, shape index: {}]   ;;  %s4945_s7 = inlined_call_operand.vmem [shape: f32[8,32], index: 7, kind: output, shape index: {}]  }
   0x1   :  { %13 = vsyncpa [#allocation5], 0  ;;  %s35_s26 = sshll.u32 %s4940_s2, 4  ;;  %s36_s26 = int_to_ptr.hbm [resolvable:$true] %s35_s26 }
   0x2   :  { %14 = vsyncpa [#allocation8], 0  ;;  %s4818_s27 = smov [#allocation4]   ;;  %s58_s8 = sshll.u32 %s4942_s4, 4  ;;  %s59_s8 = int_to_ptr.hbm [resolvable:$true] %s58_s8 }
   0x3   :  { %s37_s28 = sshll.u32 %s4818_s27, 4  ;;  %s4819_s9 = smov [#allocation7]   ;;  %s38_s28 = int_to_ptr.vmem [resolvable:$true] %s37_s28 }
   0x4   :  { %40 = dma.hbm_to_vmem [thread:$0]  %s36_s26, 32, %s38_s28, [#allocation5]  }
   0x5   :  { %s60_s10 = sshll.u32 %s4819_s9, 4  ;;  %s4820_s11 = smov 32   ;;  %s61_s10 = int_to_ptr.vmem [resolvable:$true] %s60_s10 }
   0x6   :  { %s4821_s12 = smov 2   ;;  %s21_s2 = sshll.u32 %s4939_s1, 4  ;;  %s22_s2 = int_to_ptr.hbm [resolvable:$true] %s21_s2 }
   0x7   :  { %66 = dma.hbm_to_vmem [thread:$0]  %s59_s8, 320, %s61_s10, [#allocation8], %s4820_s11, %s4820_s11, %s4821_s12  }
   0x8   :  { %s4822_s15 = smov [#allocation2]   ;;  %s45_s4 = sshll.u32 %s4941_s3, 4  ;;  %s46_s4 = int_to_ptr.hbm [resolvable:$true] %s45_s4 }
   0x9   :  { %s23_s16 = sshll.u32 %s4822_s15, 4  ;;  %s4823_s19 = smov 128   ;;  %s24_s16 = int_to_ptr.vmem [resolvable:$true] %s23_s16 }
   0xa   :  { %s4824_s20 = smov 8   ;;  %s4825_s21 = smov [#allocation6]  }
   0xb   :  { %29 = dma.hbm_to_vmem [thread:$0]  %s22_s2, 1536, %s24_s16, [#allocation3], %s4823_s19, %s4823_s19, %s4824_s20  }
   0xc   :  { %s47_s22 = sshll.u32 %s4825_s21, 4  ;;  %s74_s25 = sshll.u32 %s4944_s6, 4  ;;  %s48_s22 = int_to_ptr.vmem [resolvable:$true] %s47_s22  ;;  %s75_s25 = int_to_ptr.hbm [resolvable:$true] %s74_s25 }
   0xd   :  { %53 = dma.hbm_to_vmem [thread:$0]  %s46_s4, 40960, %s48_s22, [#allocation5], %s4823_s19, %s4823_s19, %s4824_s20  }
   0xe   :  { %s4826_s1 = smov [#allocation9]  }
   0xf   :  { %s76_s26 = sshll.u32 %s4826_s1, 4  ;;  %s77_s26 = int_to_ptr.vmem [resolvable:$true] %s76_s26 }
  0x10   :  { %79 = dma.hbm_to_vmem [thread:$0]  %s75_s25, 16, %s77_s26, [#allocation8]  }
  0x11   :  { %4812 = dma.done.wait [#allocation3], 1536  }
  0x12   :  { %4813 = vsyncadd [#allocation3], 4294965760 }
  0x13   :  { %4814 = dma.done.wait [#allocation5], 40992  }
  0x14   :  { %4815 = vsyncadd [#allocation5], 4294926304 }
  0x15   :  { %4816 = dma.done.wait [#allocation8], 336  }
  0x16   :  { %4817 = vsyncadd [#allocation8], 4294966960  ;;  %v2982_v0 = vld [vmem:[#allocation2 + $0x50] sm:$0xf]  ;;  %v4345_v1 = vld [vmem:[#allocation2 + $0x54] sm:$0xf0] }
  0x17   :  { %v4344_v2 = vld [vmem:[#allocation2 + $0x54] sm:$0xf]  ;;  %v2983_v3 = vor.u32 %v4345_v1, %v2982_v0  ;;  %v2984_v4 = vld [vmem:[#allocation2 + $0x58] sm:$0xf0]  ;;  %v2974_v5 = vld [vmem:[#allocation2 + $0x40] sm:$0xf] }
  0x18   :  { %v4343_v6 = vld [vmem:[#allocation2 + $0x44] sm:$0xf0]  ;;  %v2987_v7 = vor.u32 %v4344_v2, %v2984_v4  ;;  %v4342_v8 = vld [vmem:[#allocation2 + $0x44] sm:$0xf]  ;;  %v2976_v9 = vld [vmem:[#allocation2 + $0x48] sm:$0xf0] }
  0x19   :  { %187 = vmatpush.bf16.msra.mxu0 %v2983_v3  ;;  %v2975_v10 = vor.u32 %v4343_v6, %v2974_v5  ;;  %v2979_v11 = vor.u32 %v4342_v8, %v2976_v9  ;;  %v2966_v12 = vld [vmem:[#allocation2 + $0x30] sm:$0xf]  ;;  %v4341_v13 = vld [vmem:[#allocation2 + $0x34] sm:$0xf0]  ;;  %v4340_v14 = vld [vmem:[#allocation2 + $0x34] sm:$0xf] }
  0x1a   :  { %200 = vmatpush.bf16.msra.mxu1 %v2987_v7  ;;  %v2968_v15 = vld [vmem:[#allocation2 + $0x38] sm:$0xf0]  ;;  %v2967_v16 = vor.u32 %v4341_v13, %v2966_v12  ;;  %v2958_v17 = vld [vmem:[#allocation2 + $0x20] sm:$0xf]  ;;  %v4339_v18 = vld [vmem:[#allocation2 + $0x24] sm:$0xf0] }
  0x1b   :  { %v2971_v19 = vor.u32 %v4340_v14, %v2968_v15  ;;  %v4338_v20 = vld [vmem:[#allocation2 + $0x24] sm:$0xf]  ;;  %v3048_v21 = vld [vmem:[#allocation6 + $0x70] sm:$0xf]  ;;  %v4361_v22 = vld [vmem:[#allocation6 + $0x74] sm:$0xf0]  ;;  %v2959_v28 = vor.u32 %v4339_v18, %v2958_v17 }
  0x1c   :  { %v2960_v23 = vld [vmem:[#allocation2 + $0x28] sm:$0xf0]  ;;  %v3049_v24 = vor.u32 %v4361_v22, %v3048_v21  ;;  %v3112_v25 = vld [vmem:[#allocation6 + $0xf0] sm:$0xf]  ;;  %v4377_v26 = vld [vmem:[#allocation6 + $0xf4] sm:$0xf0] }
  0x1d   :  { %188 = vmatpush.bf16.msra.mxu0 %v2975_v10  ;;  %v3113_v27 = vor.u32 %v4377_v26, %v3112_v25  ;;  %v3040_v29 = vld [vmem:[#allocation6 + $0x60] sm:$0xf]  ;;  %v4359_v30 = vld [vmem:[#allocation6 + $0x64] sm:$0xf0]  ;;  %v2963_v32 = vor.u32 %v4338_v20, %v2960_v23  ;;  %v2950_v33 = vld [vmem:[#allocation2 + $0x10] sm:$0xf] }
  0x1e   :  { %201 = vmatpush.bf16.msra.mxu1 %v2979_v11  ;;  %413 = vmatpush.bf16.msra.mxu2 %v3049_v24  ;;  %v3104_v31 = vld [vmem:[#allocation6 + $0xe0] sm:$0xf]  ;;  %v4337_v34 = vld [vmem:[#allocation2 + $0x14] sm:$0xf0]  ;;  %v3041_v35 = vor.u32 %v4359_v30, %v3040_v29  ;;  %v4375_v36 = vld [vmem:[#allocation6 + $0xe4] sm:$0xf0] }
  0x1f   :  { %426 = vmatpush.bf16.msra.mxu3 %v3113_v27  ;;  %v4336_v37 = vld [vmem:[#allocation2 + $0x14] sm:$0xf]  ;;  %v2952_v38 = vld [vmem:[#allocation2 + $0x18] sm:$0xf0]  ;;  %v3105_v39 = vor.u32 %v4375_v36, %v3104_v31  ;;  %v2951_v44 = vor.u32 %v4337_v34, %v2950_v33  ;;  %v2942_v45 = vld [vmem:[#allocation2] sm:$0xf] }
  0x20   :  { %v3032_v40 = vld [vmem:[#allocation6 + $0x50] sm:$0xf]  ;;  %v4357_v41 = vld [vmem:[#allocation6 + $0x54] sm:$0xf0]  ;;  %v4335_v46 = vld [vmem:[#allocation2 + $0x4] sm:$0xf0]  ;;  %v2955_v49 = vor.u32 %v4336_v37, %v2952_v38 }
  0x21   :  { %189 = vmatpush.bf16.msra.mxu0 %v2967_v16  ;;  %v3096_v42 = vld [vmem:[#allocation6 + $0xd0] sm:$0xf]  ;;  %v4373_v43 = vld [vmem:[#allocation6 + $0xd4] sm:$0xf0]  ;;  %v4334_v47 = vld [vmem:[#allocation2 + $0x4] sm:$0xf]  ;;  %v3033_v48 = vor.u32 %v4357_v41, %v3032_v40  ;;  %v2943_v60 = vor.u32 %v4335_v46, %v2942_v45 }
  0x22   :  { %202 = vmatpush.bf16.msra.mxu1 %v2971_v19  ;;  %414 = vmatpush.bf16.msra.mxu2 %v3041_v35  ;;  %v2944_v50 = vld [vmem:[#allocation2 + $0x8] sm:$0xf0]  ;;  %v3097_v51 = vor.u32 %v4373_v43, %v3096_v42  ;;  %v3024_v52 = vld [vmem:[#allocation6 + $0x40] sm:$0xf]  ;;  %v4360_v54 = vld [vmem:[#allocation6 + $0x74] sm:$0xf] }
  0x23   :  { %427 = vmatpush.bf16.msra.mxu3 %v3105_v39  ;;  %v4355_v53 = vld [vmem:[#allocation6 + $0x44] sm:$0xf0]  ;;  %v3050_v55 = vld [vmem:[#allocation6 + $0x78] sm:$0xf0]  ;;  %v4376_v56 = vld [vmem:[#allocation6 + $0xf4] sm:$0xf]  ;;  %v2947_v63 = vor.u32 %v4334_v47, %v2944_v50 }
  0x24   :  { %v3114_v57 = vld [vmem:[#allocation6 + $0xf8] sm:$0xf0]  ;;  %v3088_v58 = vld [vmem:[#allocation6 + $0xc0] sm:$0xf]  ;;  %v4371_v59 = vld [vmem:[#allocation6 + $0xc4] sm:$0xf0]  ;;  %v3025_v62 = vor.u32 %v4355_v53, %v3024_v52  ;;  %v3053_v0 = vor.u32 %v4360_v54, %v3050_v55 }
  0x25   :  { %190 = vmatpush.bf16.msra.mxu0 %v2959_v28  ;;  %v101_v61 = vld [vmem:[%s4938_s0] sm:$0xff]  ;;  %v3016_v1 = vld [vmem:[#allocation6 + $0x30] sm:$0xf]  ;;  %v4353_v2 = vld [vmem:[#allocation6 + $0x34] sm:$0xf0]  ;;  %v3117_v3 = vor.u32 %v4376_v56, %v3114_v57  ;;  %v3089_v7 = vor.u32 %v4371_v59, %v3088_v58  ;;  %vm181_vm0 = vcmask 785408  }
  0x26   :  { %203 = vmatpush.bf16.msra.mxu1 %v2963_v32  ;;  %415 = vmatpush.bf16.msra.mxu2 %v3033_v48  ;;  %v4358_v4 = vld [vmem:[#allocation6 + $0x64] sm:$0xf]  ;;  %v3042_v5 = vld [vmem:[#allocation6 + $0x68] sm:$0xf0]  ;;  %v102_v8 = vpack.c.bf16 %v101_v61, %v101_v61  ;;  %v3080_v10 = vld [vmem:[#allocation6 + $0xb0] sm:$0xf]  ;;  %v3017_v12 = vor.u32 %v4353_v2, %v3016_v1 }
  0x27   :  { %428 = vmatpush.bf16.msra.mxu3 %v3097_v51  ;;  %v4374_v6 = vld [vmem:[#allocation6 + $0xe4] sm:$0xf]  ;;  %v3106_v9 = vld [vmem:[#allocation6 + $0xe8] sm:$0xf0]  ;;  %v4369_v11 = vld [vmem:[#allocation6 + $0xb4] sm:$0xf0]  ;;  %v3045_v13 = vor.u32 %v4358_v4, %v3042_v5 }
  0x28   :  { %v3008_v14 = vld [vmem:[#allocation6 + $0x20] sm:$0xf]  ;;  %v4351_v15 = vld [vmem:[#allocation6 + $0x24] sm:$0xf0]  ;;  %v3109_v16 = vor.u32 %v4374_v6, %v3106_v9  ;;  %v4356_v17 = vld [vmem:[#allocation6 + $0x54] sm:$0xf]  ;;  %v3081_v20 = vor.u32 %v4369_v11, %v3080_v10 }
  0x29   :  { %191 = vmatpush.bf16.msra.mxu0 %v2951_v44  ;;  %v3034_v18 = vld [vmem:[#allocation6 + $0x58] sm:$0xf0]  ;;  %v4372_v19 = vld [vmem:[#allocation6 + $0xd4] sm:$0xf]  ;;  %v3072_v22 = vld [vmem:[#allocation6 + $0xa0] sm:$0xf]  ;;  %v3009_v24 = vor.u32 %v4351_v15, %v3008_v14 }
  0x2a   :  { %204 = vmatpush.bf16.msra.mxu1 %v2955_v49  ;;  %416 = vmatpush.bf16.msra.mxu2 %v3025_v62  ;;  %v3098_v21 = vld [vmem:[#allocation6 + $0xd8] sm:$0xf0]  ;;  %v4367_v23 = vld [vmem:[#allocation6 + $0xa4] sm:$0xf0]  ;;  %v3037_v25 = vor.u32 %v4356_v17, %v3034_v18  ;;  %v4354_v27 = vld [vmem:[#allocation6 + $0x44] sm:$0xf] }
  0x2b   :  { %429 = vmatpush.bf16.msra.mxu3 %v3089_v7  ;;  %v3101_v26 = vor.u32 %v4372_v19, %v3098_v21  ;;  %v3026_v28 = vld [vmem:[#allocation6 + $0x48] sm:$0xf0]  ;;  %v3073_v29 = vor.u32 %v4367_v23, %v3072_v22  ;;  %v4370_v30 = vld [vmem:[#allocation6 + $0xc4] sm:$0xf]  ;;  %v4352_v34 = vld [vmem:[#allocation6 + $0x34] sm:$0xf] }
  0x2c   :  { %v3090_v31 = vld [vmem:[#allocation6 + $0xc8] sm:$0xf0]  ;;  %v3029_v32 = vor.u32 %v4354_v27, %v3026_v28  ;;  %v3018_v35 = vld [vmem:[#allocation6 + $0x38] sm:$0xf0]  ;;  %v4368_v36 = vld [vmem:[#allocation6 + $0xb4] sm:$0xf] }
  0x2d   :  { %192 = vmatpush.bf16.msra.mxu0 %v2943_v60  ;;  %v3093_v33 = vor.u32 %v4370_v30, %v3090_v31  ;;  %v3082_v37 = vld [vmem:[#allocation6 + $0xb8] sm:$0xf0]  ;;  %v3021_v38 = vor.u32 %v4352_v34, %v3018_v35  ;;  %v4350_v40 = vld [vmem:[#allocation6 + $0x24] sm:$0xf]  ;;  %v3010_v41 = vld [vmem:[#allocation6 + $0x28] sm:$0xf0] }
  0x2e   :  { %205 = vmatpush.bf16.msra.mxu1 %v2947_v63  ;;  %417 = vmatpush.bf16.msra.mxu2 %v3017_v12  ;;  %v3085_v39 = vor.u32 %v4368_v36, %v3082_v37  ;;  %v4366_v42 = vld [vmem:[#allocation6 + $0xa4] sm:$0xf]  ;;  %v3074_v43 = vld [vmem:[#allocation6 + $0xa8] sm:$0xf0]  ;;  %v3013_v44 = vor.u32 %v4350_v40, %v3010_v41  ;;  %v3000_v46 = vld [vmem:[#allocation6 + $0x10] sm:$0xf] }
  0x2f   :  { %430 = vmatpush.bf16.msra.mxu3 %v3081_v20  ;;  %v3077_v45 = vor.u32 %v4366_v42, %v3074_v43  ;;  %v4349_v47 = vld [vmem:[#allocation6 + $0x14] sm:$0xf0]  ;;  %v3064_v48 = vld [vmem:[#allocation6 + $0x90] sm:$0xf]  ;;  %v4348_v51 = vld [vmem:[#allocation6 + $0x14] sm:$0xf] }
  0x30   :  { %2988 = vmatmul.msk.bf16.vlgmr.msra.gmra.mxu0 %vm181_vm0, %v102_v8  ;;  %v3001_v49 = vor.u32 %v4349_v47, %v3000_v46  ;;  %v4365_v50 = vld [vmem:[#allocation6 + $0x94] sm:$0xf0]  ;;  %v3002_v52 = vld [vmem:[#allocation6 + $0x18] sm:$0xf0]  ;;  %v4364_v55 = vld [vmem:[#allocation6 + $0x94] sm:$0xf] }
  0x31   :  { %439 = vmatpush.bf16.msrb.mxu0 %v3053_v0  ;;  %2989 = vmatmul.msk.bf16.vlgmr.msra.gmra.mxu1 %vm181_vm0, %v102_v8  ;;  %v3065_v53 = vor.u32 %v4365_v50, %v3064_v48  ;;  %v3005_v54 = vor.u32 %v4348_v51, %v3002_v52  ;;  %v3066_v56 = vld [vmem:[#allocation6 + $0x98] sm:$0xf0]  ;;  %v2992_v58 = vld [vmem:[#allocation6] sm:$0xf]  ;;  %v4347_v59 = vld [vmem:[#allocation6 + $0x4] sm:$0xf0] }
  0x32   :  { %452 = vmatpush.bf16.msrb.mxu1 %v3117_v3  ;;  %418 = vmatpush.bf16.msra.mxu2 %v3009_v24  ;;  %v3069_v57 = vor.u32 %v4364_v55, %v3066_v56  ;;  %v3056_v60 = vld [vmem:[#allocation6 + $0x80] sm:$0xf]  ;;  %v2993_v61 = vor.u32 %v4347_v59, %v2992_v58  ;;  %v4363_v62 = vld [vmem:[#allocation6 + $0x84] sm:$0xf0]  ;;  %v4346_v63 = vld [vmem:[#allocation6 + $0x4] sm:$0xf] }
  0x33   :  { %431 = vmatpush.bf16.msra.mxu3 %v3073_v29  ;;  %v2994_v0 = vld [vmem:[#allocation6 + $0x8] sm:$0xf0]  ;;  %v3057_v1 = vor.u32 %v4363_v62, %v3056_v60  ;;  %v4362_v3 = vld [vmem:[#allocation6 + $0x84] sm:$0xf]  ;;  %v3240_v6 = vld [vmem:[#allocation6 + $0x1f0] sm:$0xf] }
  0x34   :  { %v2997_v2 = vor.u32 %v4346_v63, %v2994_v0  ;;  %v3058_v4 = vld [vmem:[#allocation6 + $0x88] sm:$0xf0]  ;;  %v4409_v7 = vld [vmem:[#allocation6 + $0x1f4] sm:$0xf0]  ;;  %v4408_v8 = vld [vmem:[#allocation6 + $0x1f4] sm:$0xf] }
  0x35   :  { %440 = vmatpush.bf16.msrb.mxu0 %v3045_v13  ;;  %v3061_v5 = vor.u32 %v4362_v3, %v3058_v4  ;;  %v3241_v9 = vor.u32 %v4409_v7, %v3240_v6  ;;  %v3242_v10 = vld [vmem:[#allocation6 + $0x1f8] sm:$0xf0]  ;;  %v3232_v11 = vld [vmem:[#allocation6 + $0x1e0] sm:$0xf]  ;;  %v4407_v12 = vld [vmem:[#allocation6 + $0x1e4] sm:$0xf0] }
  0x36   :  { %453 = vmatpush.bf16.msrb.mxu1 %v3109_v16  ;;  %419 = vmatpush.bf16.msra.mxu2 %v3001_v49  ;;  %v3245_v13 = vor.u32 %v4408_v8, %v3242_v10  ;;  %v4406_v14 = vld [vmem:[#allocation6 + $0x1e4] sm:$0xf]  ;;  %v3234_v15 = vld [vmem:[#allocation6 + $0x1e8] sm:$0xf0]  ;;  %v3176_v16 = vld [vmem:[#allocation6 + $0x170] sm:$0xf]  ;;  %v3233_v17 = vor.u32 %v4407_v12, %v3232_v11 }
  0x37   :  { %432 = vmatpush.bf16.msra.mxu3 %v3065_v53  ;;  %v4393_v18 = vld [vmem:[#allocation6 + $0x174] sm:$0xf0]  ;;  %v4392_v19 = vld [vmem:[#allocation6 + $0x174] sm:$0xf]  ;;  %v3178_v20 = vld [vmem:[#allocation6 + $0x178] sm:$0xf0]  ;;  %v3237_v21 = vor.u32 %v4406_v14, %v3234_v15 }
  0x38   :  { %v3177_v22 = vor.u32 %v4393_v18, %v3176_v16  ;;  %v3181_v23 = vor.u32 %v4392_v19, %v3178_v20  ;;  %v3224_v24 = vld [vmem:[#allocation6 + $0x1d0] sm:$0xf]  ;;  %v3226_v27 = vld [vmem:[#allocation6 + $0x1d8] sm:$0xf0]  ;;  %v3168_v28 = vld [vmem:[#allocation6 + $0x160] sm:$0xf] }
  0x39   :  { %441 = vmatpush.bf16.msrb.mxu0 %v3037_v25  ;;  %v4405_v25 = vld [vmem:[#allocation6 + $0x1d4] sm:$0xf0]  ;;  %v4391_v29 = vld [vmem:[#allocation6 + $0x164] sm:$0xf0]  ;;  %v4390_v31 = vld [vmem:[#allocation6 + $0x164] sm:$0xf] }
  0x3a   :  { %454 = vmatpush.bf16.msrb.mxu1 %v3101_v26  ;;  %420 = vmatpush.bf16.msra.mxu2 %v2993_v61  ;;  %v4404_v26 = vld [vmem:[#allocation6 + $0x1d4] sm:$0xf]  ;;  %v3169_v30 = vor.u32 %v4391_v29, %v3168_v28  ;;  %v3216_v35 = vld [vmem:[#allocation6 + $0x1c0] sm:$0xf]  ;;  %v4403_v36 = vld [vmem:[#allocation6 + $0x1c4] sm:$0xf0] }
  0x3b   :  { %433 = vmatpush.bf16.msra.mxu3 %v3057_v1  ;;  %v3229_v37 = vor.u32 %v4404_v26, %v3226_v27  ;;  %v4388_v40 = vld [vmem:[#allocation6 + $0x154] sm:$0xf]  ;;  %v4402_v41 = vld [vmem:[#allocation6 + $0x1c4] sm:$0xf]  ;;  %v3218_v42 = vld [vmem:[#allocation6 + $0x1c8] sm:$0xf0]  ;;  %v3217_v47 = vor.u32 %v4403_v36, %v3216_v35 }
  0x3c   :  { %v3162_v43 = vld [vmem:[#allocation6 + $0x158] sm:$0xf0]  ;;  %v3152_v46 = vld [vmem:[#allocation6 + $0x140] sm:$0xf]  ;;  %v4387_v48 = vld [vmem:[#allocation6 + $0x144] sm:$0xf0]  ;;  %v3221_v51 = vor.u32 %v4402_v41, %v3218_v42 }
  0x3d   :  { %442 = vmatpush.bf16.msrb.mxu0 %v3029_v32  ;;  %v3170_v32 = vld [vmem:[#allocation6 + $0x168] sm:$0xf0]  ;;  %v4386_v49 = vld [vmem:[#allocation6 + $0x144] sm:$0xf]  ;;  %v3208_v52 = vld [vmem:[#allocation6 + $0x1b0] sm:$0xf]  ;;  %v3153_v56 = vor.u32 %v4387_v48, %v3152_v46 }
  0x3e   :  { %455 = vmatpush.bf16.msrb.mxu1 %v3093_v33  ;;  %669 = vmatpush.bf16.msrb.mxu2 %v3177_v22  ;;  %v3225_v33 = vor.u32 %v4405_v25, %v3224_v24  ;;  %v3173_v34 = vor.u32 %v4390_v31, %v3170_v32  ;;  %v3154_v50 = vld [vmem:[#allocation6 + $0x148] sm:$0xf0]  ;;  %v4401_v53 = vld [vmem:[#allocation6 + $0x1b4] sm:$0xf0]  ;;  %v3210_v55 = vld [vmem:[#allocation6 + $0x1b8] sm:$0xf0] }
  0x3f   :  { %682 = vmatpush.bf16.msrb.mxu3 %v3241_v9  ;;  %v3209_v58 = vor.u32 %v4401_v53, %v3208_v52  ;;  %v3200_v60 = vld [vmem:[#allocation6 + $0x1a0] sm:$0xf]  ;;  %v4399_v61 = vld [vmem:[#allocation6 + $0x1a4] sm:$0xf0]  ;;  %v115_v62 = vld [vmem:[#allocation4] sm:$0x3] }
  0x40   :  { %v4398_v63 = vld [vmem:[#allocation6 + $0x1a4] sm:$0xf]  ;;  %v3202_v0 = vld [vmem:[#allocation6 + $0x1a8] sm:$0xf0]  ;;  %v3201_v1 = vor.u32 %v4399_v61, %v3200_v60  ;;  %v118_v4 = vperm.slane %v115_v62, 1  ;;  %vm2931_vm1 = vcmask 261120  }
  0x41   :  { %443 = vmatpush.bf16.msrb.mxu0 %v3021_v38  ;;  %v3160_v38 = vld [vmem:[#allocation6 + $0x150] sm:$0xf]  ;;  %v3205_v3 = vor.u32 %v4398_v63, %v3202_v0  ;;  %v4385_v16 = vld [vmem:[#allocation6 + $0x134] sm:$0xf0]  ;;  %v3146_v19 = vld [vmem:[#allocation6 + $0x138] sm:$0xf0] }
  0x42   :  { %456 = vmatpush.bf16.msrb.mxu1 %v3085_v39  ;;  %v4389_v39 = vld [vmem:[#allocation6 + $0x154] sm:$0xf0]  ;;  %670 = vmatpush.bf16.msrb.mxu2 %v3169_v30  ;;  %v3144_v15 = vld [vmem:[#allocation6 + $0x130] sm:$0xf]  ;;  %v3194_v25 = vld [vmem:[#allocation6 + $0x198] sm:$0xf0] }
  0x43   :  { %683 = vmatpush.bf16.msrb.mxu3 %v3233_v17  ;;  %v4384_v17 = vld [vmem:[#allocation6 + $0x134] sm:$0xf]  ;;  %v3145_v18 = vor.u32 %v4385_v16, %v3144_v15  ;;  %v4397_v22 = vld [vmem:[#allocation6 + $0x194] sm:$0xf0]  ;;  %v3136_v27 = vld [vmem:[#allocation6 + $0x120] sm:$0xf] }
  0x44   :  { %v3149_v20 = vor.u32 %v4384_v17, %v3146_v19  ;;  %v4383_v28 = vld [vmem:[#allocation6 + $0x124] sm:$0xf0]  ;;  %v4382_v29 = vld [vmem:[#allocation6 + $0x124] sm:$0xf]  ;;  %v3138_v31 = vld [vmem:[#allocation6 + $0x128] sm:$0xf0] }
  0x45   :  { %444 = vmatpush.bf16.msrb.mxu0 %v3013_v44  ;;  %v3161_v44 = vor.u32 %v4389_v39, %v3160_v38  ;;  %v3137_v30 = vor.u32 %v4383_v28, %v3136_v27  ;;  %v3141_v32 = vor.u32 %v4382_v29, %v3138_v31  ;;  %v4394_v35 = vld [vmem:[#allocation6 + $0x184] sm:$0xf]  ;;  %v3128_v39 = vld [vmem:[#allocation6 + $0x110] sm:$0xf]  ;;  %v4380_v42 = vld [vmem:[#allocation6 + $0x114] sm:$0xf] }
  0x46   :  { %457 = vmatpush.bf16.msrb.mxu1 %v3077_v45  ;;  %v3165_v45 = vor.u32 %v4388_v40, %v3162_v43  ;;  %v4381_v40 = vld [vmem:[#allocation6 + $0x114] sm:$0xf0]  ;;  %v3130_v43 = vld [vmem:[#allocation6 + $0x118] sm:$0xf0]  ;;  %v4379_v46 = vld [vmem:[#allocation6 + $0x104] sm:$0xf0] }
  0x47   :  { %684 = vmatpush.bf16.msrb.mxu3 %v3225_v33  ;;  %671 = vmatpush.bf16.msrb.mxu2 %v3161_v44  ;;  %v3184_v33 = vld [vmem:[#allocation6 + $0x180] sm:$0xf]  ;;  %v3129_v41 = vor.u32 %v4381_v40, %v3128_v39  ;;  %v3133_v44 = vor.u32 %v4380_v42, %v3130_v43  ;;  %v4441_v52 = vld [vmem:[#allocation6 + $0x2f4] sm:$0xf0]  ;;  %v4440_v53 = vld [vmem:[#allocation6 + $0x2f4] sm:$0xf] }
  0x48   :  { %v3362_v60 = vld [vmem:[#allocation6 + $0x2e8] sm:$0xf0]  ;;  %v3304_v61 = vld [vmem:[#allocation6 + $0x270] sm:$0xf]  ;;  %v4425_v63 = vld [vmem:[#allocation6 + $0x274] sm:$0xf0] }
  0x49   :  { %445 = vmatpush.bf16.msrb.mxu0 %v3005_v54  ;;  %v4400_v54 = vld [vmem:[#allocation6 + $0x1b4] sm:$0xf]  ;;  %v3344_v16 = vld [vmem:[#allocation6 + $0x2c0] sm:$0xf]  ;;  %v4435_v17 = vld [vmem:[#allocation6 + $0x2c4] sm:$0xf0] }
  0x4a   :  { %458 = vmatpush.bf16.msrb.mxu1 %v3069_v57  ;;  %v3157_v57 = vor.u32 %v4386_v49, %v3154_v50  ;;  %v3213_v59 = vor.u32 %v4400_v54, %v3210_v55  ;;  %v3122_v49 = vld [vmem:[#allocation6 + $0x108] sm:$0xf0]  ;;  %v3370_v55 = vld [vmem:[#allocation6 + $0x2f8] sm:$0xf0]  ;;  %v4424_v0 = vld [vmem:[#allocation6 + $0x274] sm:$0xf]  ;;  %v3345_v28 = vor.u32 %v4435_v17, %v3344_v16 }
  0x4b   :  { %685 = vmatpush.bf16.msrb.mxu3 %v3217_v47  ;;  %672 = vmatpush.bf16.msrb.mxu2 %v3153_v56  ;;  %v4378_v47 = vld [vmem:[#allocation6 + $0x104] sm:$0xf]  ;;  %v3360_v56 = vld [vmem:[#allocation6 + $0x2e0] sm:$0xf]  ;;  %v3288_v19 = vld [vmem:[#allocation6 + $0x250] sm:$0xf] }
  0x4c   :  { %v3125_v50 = vor.u32 %v4378_v47, %v3122_v49  ;;  %v247_v27 = vld [vmem:[#allocation7] sm:$0x3]  ;;  %v4433_v49 = vld [vmem:[#allocation6 + $0x2b4] sm:$0xf0]  ;;  %v4414_v16 = vld [vmem:[#allocation6 + $0x224] sm:$0xf] }
  0x4d   :  { %446 = vmatpush.bf16.msrb.mxu0 %v2997_v2  ;;  %v117_v2 = vperm.slane %v115_v62, 0 }
  0x4e   :  { %459 = vmatpush.bf16.msrb.mxu1 %v3061_v5 }
  0x4f   :  { %686 = vmatpush.bf16.msrb.mxu3 %v3209_v58  ;;  %673 = vmatpush.bf16.msrb.mxu2 %v3145_v18  ;;  %v3373_v58 = vor.u32 %v4440_v53, %v3370_v55  ;;  %v4419_v55 = vld [vmem:[#allocation6 + $0x244] sm:$0xf0] }
  0x51   :  { %695 = vmatpush.bf16.msra.mxu0 %v3181_v23  ;;  %v4396_v23 = vld [vmem:[#allocation6 + $0x194] sm:$0xf] }
  0x52   :  { %708 = vmatpush.bf16.msra.mxu1 %v3245_v13  ;;  %v3197_v26 = vor.u32 %v4396_v23, %v3194_v25  ;;  %v3346_v23 = vld [vmem:[#allocation6 + $0x2c8] sm:$0xf0] }
  0x53   :  { %687 = vmatpush.bf16.msrb.mxu3 %v3201_v1  ;;  %674 = vmatpush.bf16.msrb.mxu2 %v3137_v30  ;;  %v3306_v1 = vld [vmem:[#allocation6 + $0x278] sm:$0xf0]  ;;  %v250_v30 = vperm.slane %v247_v27, 1 }
  0x55   :  { %696 = vmatpush.bf16.msra.mxu0 %v3173_v34  ;;  %v4395_v34 = vld [vmem:[#allocation6 + $0x184] sm:$0xf0] }
  0x56   :  { %709 = vmatpush.bf16.msra.mxu1 %v3237_v21  ;;  %v3192_v21 = vld [vmem:[#allocation6 + $0x190] sm:$0xf]  ;;  %v3185_v36 = vor.u32 %v4395_v34, %v3184_v33 }
  0x57   :  { %v3193_v24 = vor.u32 %v4397_v22, %v3192_v21  ;;  %675 = vmatpush.bf16.msrb.mxu2 %v3129_v41  ;;  %v4420_v21 = vld [vmem:[#allocation6 + $0x254] sm:$0xf]  ;;  %v4434_v22 = vld [vmem:[#allocation6 + $0x2c4] sm:$0xf] }
  0x58   :  { %v3349_v29 = vor.u32 %v4434_v22, %v3346_v23  ;;  %v4426_v22 = vld [vmem:[#allocation6 + $0x284] sm:$0xf] }
  0x59   :  { %697 = vmatpush.bf16.msra.mxu0 %v3165_v45  ;;  %688 = vmatpush.bf16.msrb.mxu3 %v3193_v24  ;;  %v3120_v45 = vld [vmem:[#allocation6 + $0x100] sm:$0xf]  ;;  %v3290_v24 = vld [vmem:[#allocation6 + $0x258] sm:$0xf0] }
  0x5a   :  { %710 = vmatpush.bf16.msra.mxu1 %v3229_v37  ;;  %v3186_v37 = vld [vmem:[#allocation6 + $0x188] sm:$0xf0]  ;;  %v3121_v48 = vor.u32 %v4379_v46, %v3120_v45 }
  0x5b   :  { %v3189_v38 = vor.u32 %v4394_v35, %v3186_v37  ;;  %v249_v35 = vperm.slane %v247_v27, 0  ;;  %v4413_v27 = vld [vmem:[#allocation6 + $0x214] sm:$0xf0] }
  0x5c   :  { %676 = vmatpush.bf16.msrb.mxu2 %v3121_v48  ;;  %v3336_v48 = vld [vmem:[#allocation6 + $0x2b0] sm:$0xf] }
  0x5d   :  { %698 = vmatpush.bf16.msra.mxu0 %v3157_v57  ;;  %689 = vmatpush.bf16.msrb.mxu3 %v3185_v36  ;;  %v4439_v57 = vld [vmem:[#allocation6 + $0x2e4] sm:$0xf0] }
  0x5e   :  { %711 = vmatpush.bf16.msra.mxu1 %v3221_v51  ;;  %v3368_v51 = vld [vmem:[#allocation6 + $0x2f0] sm:$0xf]  ;;  %v3361_v62 = vor.u32 %v4439_v57, %v3360_v56  ;;  %v4418_v56 = vld [vmem:[#allocation6 + $0x244] sm:$0xf] }
  0x5f   :  { %v3369_v54 = vor.u32 %v4441_v52, %v3368_v51  ;;  %v3337_v51 = vor.u32 %v4433_v49, %v3336_v48  ;;  %v3338_v52 = vld [vmem:[#allocation6 + $0x2b8] sm:$0xf0]  ;;  %v3432_v48 = vld [vmem:[#allocation6 + $0x370] sm:$0xf] }
  0x61   :  { %699 = vmatpush.bf16.msra.mxu0 %v3149_v20  ;;  %v4421_v20 = vld [vmem:[#allocation6 + $0x254] sm:$0xf0] }
  0x62   :  { %712 = vmatpush.bf16.msra.mxu1 %v3213_v59  ;;  %v4438_v59 = vld [vmem:[#allocation6 + $0x2e4] sm:$0xf]  ;;  %v3289_v25 = vor.u32 %v4421_v20, %v3288_v19  ;;  %v3312_v20 = vld [vmem:[#allocation6 + $0x280] sm:$0xf] }
  0x65   :  { %700 = vmatpush.bf16.msra.mxu0 %v3141_v32 }
  0x66   :  { %713 = vmatpush.bf16.msra.mxu1 %v3205_v3  ;;  %v3305_v3 = vor.u32 %v4425_v63, %v3304_v61  ;;  %v4430_v63 = vld [vmem:[#allocation6 + $0x2a4] sm:$0xf] }
  0x69   :  { %701 = vmatpush.bf16.msra.mxu0 %v3133_v44 }
  0x6a   :  { %714 = vmatpush.bf16.msra.mxu1 %v3197_v26  ;;  %v3293_v26 = vor.u32 %v4420_v21, %v3290_v24  ;;  %v4427_v21 = vld [vmem:[#allocation6 + $0x284] sm:$0xf0]  ;;  %v3314_v24 = vld [vmem:[#allocation6 + $0x288] sm:$0xf0] }
  0x6b   :  { %v3313_v23 = vor.u32 %v4427_v21, %v3312_v20 }
  0x6d   :  { %702 = vmatpush.bf16.msra.mxu0 %v3125_v50  ;;  %v4432_v50 = vld [vmem:[#allocation6 + $0x2b4] sm:$0xf] }
  0x6e   :  { %715 = vmatpush.bf16.msra.mxu1 %v3189_v38  ;;  %v3341_v53 = vor.u32 %v4432_v50, %v3338_v52  ;;  %v4457_v50 = vld [vmem:[#allocation6 + $0x374] sm:$0xf0]  ;;  %v3434_v52 = vld [vmem:[#allocation6 + $0x378] sm:$0xf0] }
  0xad   :  { %v194_v5 = vpop.f32.mrf.mxu0 }
  0xae   :  { %v195_v6 = vadd.f32 %v194_v5, %v117_v2  ;;  %v207_v7 = vpop.f32.mrf.mxu1  ;;  %v3365_v2 = vor.u32 %v4438_v59, %v3362_v60  ;;  %v3352_v5 = vld [vmem:[#allocation6 + $0x2d0] sm:$0xf]  ;;  %v3328_v59 = vld [vmem:[#allocation6 + $0x2a0] sm:$0xf]  ;;  %v4431_v60 = vld [vmem:[#allocation6 + $0x2a4] sm:$0xf0] }
  0xaf   :  { %v208_v8 = vadd.f32 %v207_v7, %v118_v4  ;;  %v3309_v4 = vor.u32 %v4424_v0, %v3306_v1  ;;  %v4436_v7 = vld [vmem:[#allocation6 + $0x2d4] sm:$0xf]  ;;  %v3330_v0 = vld [vmem:[#allocation6 + $0x2a8] sm:$0xf0] }
  0xb0   :  { %v211_v9 = vmax.f32 %v195_v6, 0.0  ;;  %v4437_v6 = vld [vmem:[#allocation6 + $0x2d4] sm:$0xf0]  ;;  %v3333_v1 = vor.u32 %v4430_v63, %v3330_v0  ;;  %v4454_v63 = vld [vmem:[#allocation6 + $0x364] sm:$0xf] }
  0xb1   :  { %v212_v10 = vmax.f32 %v208_v8, 0.0  ;;  %v3354_v8 = vld [vmem:[#allocation6 + $0x2d8] sm:$0xf0]  ;;  %v3426_v0 = vld [vmem:[#allocation6 + $0x368] sm:$0xf0] }
  0xb2   :  { %v213_v11 = vpack.c.bf16 %v211_v9, %v211_v9  ;;  %v3296_v9 = vld [vmem:[#allocation6 + $0x260] sm:$0xf]  ;;  %v3357_v18 = vor.u32 %v4436_v7, %v3354_v8  ;;  %v3320_v8 = vld [vmem:[#allocation6 + $0x290] sm:$0xf] }
  0xb3   :  { %v214_v12 = vpack.c.bf16 %v212_v10, %v212_v10  ;;  %v4423_v10 = vld [vmem:[#allocation6 + $0x264] sm:$0xf0] }
  0xb4   :  { %421 = vmatmul.bf16.vlgmr.msra.gmra.mxu2 %v213_v11  ;;  %447 = vmatmul.bf16.vlgmr.msrb.gmra.mxu0 %v213_v11  ;;  %v3297_v11 = vor.u32 %v4423_v10, %v3296_v9  ;;  %v4429_v9 = vld [vmem:[#allocation6 + $0x294] sm:$0xf0] }
  0xb5   :  { %434 = vmatmul.bf16.vlgmr.msra.gmra.mxu3 %v214_v12  ;;  %460 = vmatmul.bf16.vlgmr.msrb.gmra.mxu1 %v214_v12  ;;  %v196_v13 = vpop.f32.mrf.mxu0  ;;  %v4422_v12 = vld [vmem:[#allocation6 + $0x264] sm:$0xf]  ;;  %v3321_v10 = vor.u32 %v4429_v9, %v3320_v8  ;;  %v4452_v8 = vld [vmem:[#allocation6 + $0x354] sm:$0xf] }
  0xb6   :  { %v209_v14 = vpop.f32.mrf.mxu1  ;;  %938 = vmatpush.bf16.msra.mxu3 %v3369_v54  ;;  %964 = vmatpush.bf16.msrb.mxu1 %v3373_v58  ;;  %v3298_v13 = vld [vmem:[#allocation6 + $0x268] sm:$0xf0]  ;;  %v3280_v54 = vld [vmem:[#allocation6 + $0x240] sm:$0xf]  ;;  %v4466_v9 = vld [vmem:[#allocation6 + $0x3c4] sm:$0xf] }
  0xb7   :  { %925 = vmatpush.bf16.msra.mxu2 %v3305_v3  ;;  %951 = vmatpush.bf16.msrb.mxu0 %v3309_v4  ;;  %v3353_v14 = vor.u32 %v4437_v6, %v3352_v5  ;;  %v3301_v15 = vor.u32 %v4422_v12, %v3298_v13  ;;  %v3281_v57 = vor.u32 %v4419_v55, %v3280_v54  ;;  %v3282_v58 = vld [vmem:[#allocation6 + $0x248] sm:$0xf0]  ;;  %v4417_v3 = vld [vmem:[#allocation6 + $0x234] sm:$0xf0]  ;;  %v4416_v4 = vld [vmem:[#allocation6 + $0x234] sm:$0xf] }
  0xb8   :  { %v3285_v61 = vor.u32 %v4418_v56, %v3282_v58  ;;  %v3274_v6 = vld [vmem:[#allocation6 + $0x238] sm:$0xf0]  ;;  %v3433_v54 = vor.u32 %v4457_v50, %v3432_v48  ;;  %v3480_v56 = vld [vmem:[#allocation6 + $0x3d0] sm:$0xf]  ;;  %v4468_v58 = vld [vmem:[#allocation6 + $0x3d4] sm:$0xf] }
  0xb9   :  { %v3277_v7 = vor.u32 %v4416_v4, %v3274_v6  ;;  %v3322_v12 = vld [vmem:[#allocation6 + $0x298] sm:$0xf0]  ;;  %v4467_v4 = vld [vmem:[#allocation6 + $0x3c4] sm:$0xf0]  ;;  %v3416_v6 = vld [vmem:[#allocation6 + $0x350] sm:$0xf] }
  0xba   :  { %939 = vmatpush.bf16.msra.mxu3 %v3361_v62  ;;  %965 = vmatpush.bf16.msrb.mxu1 %v3365_v2  ;;  %v3329_v62 = vor.u32 %v4431_v60, %v3328_v59  ;;  %v3272_v2 = vld [vmem:[#allocation6 + $0x230] sm:$0xf]  ;;  %v3482_v59 = vld [vmem:[#allocation6 + $0x3d8] sm:$0xf0]  ;;  %v3424_v60 = vld [vmem:[#allocation6 + $0x360] sm:$0xf] }
  0xbb   :  { %926 = vmatpush.bf16.msra.mxu2 %v3297_v11  ;;  %952 = vmatpush.bf16.msrb.mxu0 %v3301_v15  ;;  %v3273_v5 = vor.u32 %v4417_v3, %v3272_v2  ;;  %v4428_v11 = vld [vmem:[#allocation6 + $0x294] sm:$0xf]  ;;  %v4415_v15 = vld [vmem:[#allocation6 + $0x224] sm:$0xf0]  ;;  %v3429_v2 = vor.u32 %v4454_v63, %v3426_v0  ;;  %v3472_v3 = vld [vmem:[#allocation6 + $0x3c0] sm:$0xf] }
  0xbc   :  { %v3325_v13 = vor.u32 %v4428_v11, %v3322_v12  ;;  %v3418_v11 = vld [vmem:[#allocation6 + $0x358] sm:$0xf0]  ;;  %v4462_v50 = vld [vmem:[#allocation6 + $0x3a4] sm:$0xf] }
  0xbd   :  { %v3450_v63 = vld [vmem:[#allocation6 + $0x398] sm:$0xf0] }
  0xbe   :  { %940 = vmatpush.bf16.msra.mxu3 %v3353_v14  ;;  %966 = vmatpush.bf16.msrb.mxu1 %v3357_v18  ;;  %v3264_v14 = vld [vmem:[#allocation6 + $0x220] sm:$0xf]  ;;  %v3266_v18 = vld [vmem:[#allocation6 + $0x228] sm:$0xf0] }
  0xbf   :  { %927 = vmatpush.bf16.msra.mxu2 %v3289_v25  ;;  %953 = vmatpush.bf16.msrb.mxu0 %v3293_v26  ;;  %v3265_v17 = vor.u32 %v4415_v15, %v3264_v14  ;;  %v3269_v19 = vor.u32 %v4414_v16, %v3266_v18  ;;  %v3317_v25 = vor.u32 %v4426_v22, %v3314_v24  ;;  %v3256_v26 = vld [vmem:[#allocation6 + $0x210] sm:$0xf]  ;;  %v503_v15 = vld [vmem:[#allocation7 + $0x2] sm:$0x3] }
  0xc0   :  { %v3473_v16 = vor.u32 %v4467_v4, %v3472_v3  ;;  %v506_v18 = vperm.slane %v503_v15, 1  ;;  %v505_v24 = vperm.slane %v503_v15, 0  ;;  %v4446_v3 = vld [vmem:[#allocation6 + $0x324] sm:$0xf] }
  0xc2   :  { %941 = vmatpush.bf16.msra.mxu3 %v3345_v28  ;;  %967 = vmatpush.bf16.msrb.mxu1 %v3349_v29  ;;  %v3257_v28 = vor.u32 %v4413_v27, %v3256_v26  ;;  %v4412_v29 = vld [vmem:[#allocation6 + $0x214] sm:$0xf] }
  0xc3   :  { %928 = vmatpush.bf16.msra.mxu2 %v3281_v57  ;;  %954 = vmatpush.bf16.msrb.mxu0 %v3285_v61  ;;  %v4469_v57 = vld [vmem:[#allocation6 + $0x3d4] sm:$0xf0]  ;;  %v4455_v61 = vld [vmem:[#allocation6 + $0x364] sm:$0xf0] }
  0xc6   :  { %942 = vmatpush.bf16.msra.mxu3 %v3337_v51  ;;  %968 = vmatpush.bf16.msrb.mxu1 %v3341_v53  ;;  %v4456_v51 = vld [vmem:[#allocation6 + $0x374] sm:$0xf] }
  0xc7   :  { %929 = vmatpush.bf16.msra.mxu2 %v3273_v5  ;;  %955 = vmatpush.bf16.msrb.mxu0 %v3277_v7  ;;  %v3437_v55 = vor.u32 %v4456_v51, %v3434_v52  ;;  %v3485_v5 = vor.u32 %v4468_v58, %v3482_v59  ;;  %v4453_v7 = vld [vmem:[#allocation6 + $0x354] sm:$0xf0]  ;;  %v3458_v51 = vld [vmem:[#allocation6 + $0x3a8] sm:$0xf0]  ;;  %v3448_v59 = vld [vmem:[#allocation6 + $0x390] sm:$0xf] }
  0xc8   :  { %v3417_v12 = vor.u32 %v4453_v7, %v3416_v6  ;;  %v3461_v52 = vor.u32 %v4462_v50, %v3458_v51  ;;  %v3440_v7 = vld [vmem:[#allocation6 + $0x380] sm:$0xf]  ;;  %v4486_v50 = vld [vmem:[#allocation6 + $0x464] sm:$0xf]  ;;  %v3554_v51 = vld [vmem:[#allocation6 + $0x468] sm:$0xf0] }
  0xca   :  { %943 = vmatpush.bf16.msra.mxu3 %v3329_v62  ;;  %969 = vmatpush.bf16.msrb.mxu1 %v3333_v1  ;;  %v3425_v62 = vor.u32 %v4455_v61, %v3424_v60  ;;  %v3481_v1 = vor.u32 %v4469_v57, %v3480_v56  ;;  %v3402_v57 = vld [vmem:[#allocation6 + $0x338] sm:$0xf0]  ;;  %v4461_v60 = vld [vmem:[#allocation6 + $0x394] sm:$0xf0] }
  0xcb   :  { %930 = vmatpush.bf16.msra.mxu2 %v3265_v17  ;;  %956 = vmatpush.bf16.msrb.mxu0 %v3269_v19  ;;  %v3449_v61 = vor.u32 %v4461_v60, %v3448_v59  ;;  %v4484_v59 = vld [vmem:[#allocation6 + $0x454] sm:$0xf]  ;;  %v4498_v60 = vld [vmem:[#allocation6 + $0x4c4] sm:$0xf] }
  0xce   :  { %944 = vmatpush.bf16.msra.mxu3 %v3321_v10  ;;  %970 = vmatpush.bf16.msrb.mxu1 %v3325_v13  ;;  %v3474_v10 = vld [vmem:[#allocation6 + $0x3c8] sm:$0xf0]  ;;  %v3421_v13 = vor.u32 %v4452_v8, %v3418_v11  ;;  %v4459_v8 = vld [vmem:[#allocation6 + $0x384] sm:$0xf0] }
  0xcf   :  { %931 = vmatpush.bf16.msra.mxu2 %v3257_v28  ;;  %v3477_v17 = vor.u32 %v4466_v9, %v3474_v10  ;;  %v4458_v9 = vld [vmem:[#allocation6 + $0x384] sm:$0xf]  ;;  %v3441_v10 = vor.u32 %v4459_v8, %v3440_v7  ;;  %v3442_v11 = vld [vmem:[#allocation6 + $0x388] sm:$0xf0] }
  0xd2   :  { %945 = vmatpush.bf16.msra.mxu3 %v3313_v23  ;;  %971 = vmatpush.bf16.msrb.mxu1 %v3317_v25 }
 0x131   :  { %v448_v31 = vpop.f32.mrf.mxu0 }
 0x132   :  { %v449_v32 = vadd.f32 %v448_v31, %v250_v30  ;;  %v461_v33 = vpop.f32.mrf.mxu1  ;;  %v3258_v30 = vld [vmem:[#allocation6 + $0x218] sm:$0xf0] }
 0x133   :  { %v3261_v31 = vor.u32 %v4412_v29, %v3258_v30 }
 0x134   :  { %v462_v34 = vadd.f32 %v461_v33, %v449_v32  ;;  %v3248_v32 = vld [vmem:[#allocation6 + $0x200] sm:$0xf]  ;;  %v4411_v33 = vld [vmem:[#allocation6 + $0x204] sm:$0xf0] }
 0x135   :  { %957 = vmatpush.bf16.msrb.mxu0 %v3261_v31 }
 0x136   :  { %v466_v36 = vmax.f32 %v462_v34, 0.0  ;;  %v4410_v34 = vld [vmem:[#allocation6 + $0x204] sm:$0xf] }
 0x137   :  { %v422_v37 = vpop.f32.mrf.mxu2 }
 0x138   :  { %v468_v38 = vpack.c.bf16 %v466_v36, %v466_v36  ;;  %v423_v39 = vadd.f32 %v422_v37, %v249_v35  ;;  %v435_v40 = vpop.f32.mrf.mxu3  ;;  %v3249_v35 = vor.u32 %v4411_v33, %v3248_v32  ;;  %v3250_v36 = vld [vmem:[#allocation6 + $0x208] sm:$0xf0] }
 0x139   :  { %v450_v41 = vpop.f32.mrf.mxu0  ;;  %v3253_v37 = vor.u32 %v4410_v34, %v3250_v36  ;;  %v4465_v36 = vld [vmem:[#allocation6 + $0x3b4] sm:$0xf0] }
 0x13a   :  { %v436_v42 = vadd.f32 %v435_v40, %v423_v39  ;;  %v463_v43 = vpop.f32.mrf.mxu1  ;;  %690 = vmatmul.bf16.vlgmr.msrb.gmra.mxu3 %v468_v38  ;;  %716 = vmatmul.bf16.vlgmr.msra.gmra.mxu1 %v468_v38  ;;  %v3496_v38 = vld [vmem:[#allocation6 + $0x3f0] sm:$0xf]  ;;  %v4473_v39 = vld [vmem:[#allocation6 + $0x3f4] sm:$0xf0]  ;;  %v4472_v40 = vld [vmem:[#allocation6 + $0x3f4] sm:$0xf] }
 0x13b   :  { %932 = vmatpush.bf16.msra.mxu2 %v3249_v35  ;;  %958 = vmatpush.bf16.msrb.mxu0 %v3253_v37  ;;  %v3497_v41 = vor.u32 %v4473_v39, %v3496_v38  ;;  %v3488_v43 = vld [vmem:[#allocation6 + $0x3e0] sm:$0xf]  ;;  %v3464_v35 = vld [vmem:[#allocation6 + $0x3b0] sm:$0xf]  ;;  %v4464_v37 = vld [vmem:[#allocation6 + $0x3b4] sm:$0xf] }
 0x13c   :  { %v465_v44 = vmax.f32 %v436_v42, 0.0  ;;  %v3498_v42 = vld [vmem:[#allocation6 + $0x3f8] sm:$0xf0]  ;;  %v3465_v38 = vor.u32 %v4465_v36, %v3464_v35  ;;  %v3560_v35 = vld [vmem:[#allocation6 + $0x470] sm:$0xf] }
 0x13d   :  { %1194 = vmatpush.bf16.msrb.mxu3 %v3497_v41  ;;  %v3466_v39 = vld [vmem:[#allocation6 + $0x3b8] sm:$0xf0]  ;;  %v3408_v41 = vld [vmem:[#allocation6 + $0x340] sm:$0xf] }
 0x13e   :  { %v467_v45 = vpack.c.bf16 %v465_v44, %v465_v44  ;;  %v4471_v44 = vld [vmem:[#allocation6 + $0x3e4] sm:$0xf0] }
 0x13f   :  { %v424_v46 = vpop.f32.mrf.mxu2  ;;  %v3489_v49 = vor.u32 %v4471_v44, %v3488_v43  ;;  %v4450_v43 = vld [vmem:[#allocation6 + $0x344] sm:$0xf] }
 0x140   :  { %v437_v47 = vpop.f32.mrf.mxu3  ;;  %677 = vmatmul.bf16.vlgmr.msrb.gmra.mxu2 %v467_v45  ;;  %703 = vmatmul.bf16.vlgmr.msra.gmra.mxu0 %v467_v45  ;;  %v3501_v45 = vor.u32 %v4472_v40, %v3498_v42  ;;  %v4470_v46 = vld [vmem:[#allocation6 + $0x3e4] sm:$0xf]  ;;  %v3469_v40 = vor.u32 %v4464_v37, %v3466_v39  ;;  %v4451_v42 = vld [vmem:[#allocation6 + $0x344] sm:$0xf0]  ;;  %v4489_v37 = vld [vmem:[#allocation6 + $0x474] sm:$0xf0] }
 0x141   :  { %v3490_v47 = vld [vmem:[#allocation6 + $0x3e8] sm:$0xf0]  ;;  %1181 = vmatpush.bf16.msrb.mxu2 %v3433_v54  ;;  %1207 = vmatpush.bf16.msra.mxu0 %v3437_v55  ;;  %v3409_v44 = vor.u32 %v4451_v42, %v3408_v41  ;;  %v4449_v54 = vld [vmem:[#allocation6 + $0x334] sm:$0xf0]  ;;  %v4448_v55 = vld [vmem:[#allocation6 + $0x334] sm:$0xf]  ;;  %v3561_v41 = vor.u32 %v4489_v37, %v3560_v35 }
 0x142   :  { %1220 = vmatpush.bf16.msra.mxu1 %v3501_v45  ;;  %v3493_v53 = vor.u32 %v4470_v46, %v3490_v47  ;;  %1195 = vmatpush.bf16.msrb.mxu3 %v3489_v49  ;;  %v3410_v45 = vld [vmem:[#allocation6 + $0x348] sm:$0xf0]  ;;  %v3456_v46 = vld [vmem:[#allocation6 + $0x3a0] sm:$0xf]  ;;  %v4463_v47 = vld [vmem:[#allocation6 + $0x3a4] sm:$0xf0]  ;;  %v3405_v58 = vor.u32 %v4448_v55, %v3402_v57 }
 0x143   :  { %v3413_v48 = vor.u32 %v4450_v43, %v3410_v45  ;;  %v3457_v49 = vor.u32 %v4463_v47, %v3456_v46  ;;  %v3562_v39 = vld [vmem:[#allocation6 + $0x478] sm:$0xf0]  ;;  %v3608_v43 = vld [vmem:[#allocation6 + $0x4d0] sm:$0xf]  ;;  %v4500_v45 = vld [vmem:[#allocation6 + $0x4d4] sm:$0xf] }
 0x144   :  { %v3610_v46 = vld [vmem:[#allocation6 + $0x4d8] sm:$0xf0]  ;;  %v3552_v47 = vld [vmem:[#allocation6 + $0x460] sm:$0xf]  ;;  %v4499_v55 = vld [vmem:[#allocation6 + $0x4c4] sm:$0xf0] }
 0x145   :  { %1182 = vmatpush.bf16.msrb.mxu2 %v3425_v62  ;;  %1208 = vmatpush.bf16.msra.mxu0 %v3429_v2  ;;  %v4460_v62 = vld [vmem:[#allocation6 + $0x394] sm:$0xf]  ;;  %v4447_v2 = vld [vmem:[#allocation6 + $0x324] sm:$0xf0]  ;;  %v3544_v57 = vld [vmem:[#allocation6 + $0x450] sm:$0xf] }
 0x146   :  { %1221 = vmatpush.bf16.msra.mxu1 %v3493_v53  ;;  %1196 = vmatpush.bf16.msrb.mxu3 %v3481_v1  ;;  %v3400_v53 = vld [vmem:[#allocation6 + $0x330] sm:$0xf]  ;;  %v3453_v0 = vor.u32 %v4460_v62, %v3450_v63  ;;  %v3392_v1 = vld [vmem:[#allocation6 + $0x320] sm:$0xf]  ;;  %v3546_v62 = vld [vmem:[#allocation6 + $0x458] sm:$0xf0] }
 0x147   :  { %v3401_v56 = vor.u32 %v4449_v54, %v3400_v53  ;;  %v3393_v4 = vor.u32 %v4447_v2, %v3392_v1  ;;  %v3557_v53 = vor.u32 %v4486_v50, %v3554_v51  ;;  %v3600_v54 = vld [vmem:[#allocation6 + $0x4c0] sm:$0xf]  ;;  %v759_v2 = vld [vmem:[#allocation7 + $0x4] sm:$0x3]  ;;  %v3578_v50 = vld [vmem:[#allocation6 + $0x498] sm:$0xf0] }
 0x148   :  { %v4494_v37 = vld [vmem:[#allocation6 + $0x4a4] sm:$0xf] }
 0x149   :  { %1183 = vmatpush.bf16.msrb.mxu2 %v3417_v12  ;;  %1209 = vmatpush.bf16.msra.mxu0 %v3421_v13  ;;  %v3445_v12 = vor.u32 %v4458_v9, %v3442_v11  ;;  %v3384_v13 = vld [vmem:[#allocation6 + $0x310] sm:$0xf]  ;;  %v761_v11 = vperm.slane %v759_v2, 0 }
 0x14a   :  { %1222 = vmatpush.bf16.msra.mxu1 %v3485_v5  ;;  %1197 = vmatpush.bf16.msrb.mxu3 %v3473_v16  ;;  %v3394_v5 = vld [vmem:[#allocation6 + $0x328] sm:$0xf0]  ;;  %v4444_v16 = vld [vmem:[#allocation6 + $0x314] sm:$0xf] }
 0x14b   :  { %v3397_v6 = vor.u32 %v4446_v3, %v3394_v5  ;;  %v3601_v3 = vor.u32 %v4499_v55, %v3600_v54  ;;  %v762_v5 = vperm.slane %v759_v2, 1  ;;  %v4478_v54 = vld [vmem:[#allocation6 + $0x424] sm:$0xf] }
 0x14d   :  { %1184 = vmatpush.bf16.msrb.mxu2 %v3409_v44  ;;  %1210 = vmatpush.bf16.msra.mxu0 %v3413_v48  ;;  %v4501_v44 = vld [vmem:[#allocation6 + $0x4d4] sm:$0xf0]  ;;  %v4487_v48 = vld [vmem:[#allocation6 + $0x464] sm:$0xf0] }
 0x14e   :  { %1223 = vmatpush.bf16.msra.mxu1 %v3477_v17  ;;  %1198 = vmatpush.bf16.msrb.mxu3 %v3465_v38  ;;  %v3386_v17 = vld [vmem:[#allocation6 + $0x318] sm:$0xf0]  ;;  %v4488_v38 = vld [vmem:[#allocation6 + $0x474] sm:$0xf] }
 0x14f   :  { %v3565_v42 = vor.u32 %v4488_v38, %v3562_v39  ;;  %v3586_v38 = vld [vmem:[#allocation6 + $0x4a8] sm:$0xf0] }
 0x150   :  { %v3589_v39 = vor.u32 %v4494_v37, %v3586_v38  ;;  %v4518_v37 = vld [vmem:[#allocation6 + $0x564] sm:$0xf]  ;;  %v3682_v38 = vld [vmem:[#allocation6 + $0x568] sm:$0xf0] }
 0x151   :  { %1185 = vmatpush.bf16.msrb.mxu2 %v3401_v56  ;;  %1211 = vmatpush.bf16.msra.mxu0 %v3405_v58  ;;  %v3613_v56 = vor.u32 %v4500_v45, %v3610_v46  ;;  %v4485_v58 = vld [vmem:[#allocation6 + $0x454] sm:$0xf0]  ;;  %v3576_v46 = vld [vmem:[#allocation6 + $0x490] sm:$0xf] }
 0x152   :  { %1224 = vmatpush.bf16.msra.mxu1 %v3469_v40  ;;  %1199 = vmatpush.bf16.msrb.mxu3 %v3457_v49  ;;  %v3553_v49 = vor.u32 %v4487_v48, %v3552_v47  ;;  %v3545_v63 = vor.u32 %v4485_v58, %v3544_v57  ;;  %v4493_v47 = vld [vmem:[#allocation6 + $0x494] sm:$0xf0]  ;;  %v3568_v58 = vld [vmem:[#allocation6 + $0x480] sm:$0xf] }
 0x153   :  { %v3577_v48 = vor.u32 %v4493_v47, %v3576_v46  ;;  %v4516_v46 = vld [vmem:[#allocation6 + $0x554] sm:$0xf]  ;;  %v4530_v47 = vld [vmem:[#allocation6 + $0x5c4] sm:$0xf] }
 0x155   :  { %1186 = vmatpush.bf16.msrb.mxu2 %v3393_v4  ;;  %1212 = vmatpush.bf16.msra.mxu0 %v3397_v6 }
 0x156   :  { %1225 = vmatpush.bf16.msra.mxu1 %v3461_v52  ;;  %1200 = vmatpush.bf16.msrb.mxu3 %v3449_v61  ;;  %v3609_v52 = vor.u32 %v4501_v44, %v3608_v43  ;;  %v3602_v61 = vld [vmem:[#allocation6 + $0x4c8] sm:$0xf0]  ;;  %v3530_v44 = vld [vmem:[#allocation6 + $0x438] sm:$0xf0] }
 0x157   :  { %v3605_v4 = vor.u32 %v4498_v60, %v3602_v61  ;;  %v4490_v60 = vld [vmem:[#allocation6 + $0x484] sm:$0xf] }
 0x15a   :  { %1226 = vmatpush.bf16.msra.mxu1 %v3453_v0  ;;  %1201 = vmatpush.bf16.msrb.mxu3 %v3441_v10  ;;  %v3549_v0 = vor.u32 %v4484_v59, %v3546_v62  ;;  %v4491_v59 = vld [vmem:[#allocation6 + $0x484] sm:$0xf0]  ;;  %v3570_v62 = vld [vmem:[#allocation6 + $0x488] sm:$0xf0] }
 0x15b   :  { %v3569_v61 = vor.u32 %v4491_v59, %v3568_v58 }
 0x15e   :  { %1227 = vmatpush.bf16.msra.mxu1 %v3445_v12 }
 0x1b7   :  { %v717_v14 = vpop.f32.mrf.mxu1 }
 0x1bd   :  { %v691_v19 = vpop.f32.mrf.mxu3  ;;  %v704_v20 = vpop.f32.mrf.mxu0 }
 0x1be   :  { %v705_v21 = vadd.f32 %v704_v20, %v506_v18  ;;  %v3389_v18 = vor.u32 %v4444_v16, %v3386_v17  ;;  %v4443_v20 = vld [vmem:[#allocation6 + $0x304] sm:$0xf0] }
 0x1bf   :  { %v719_v22 = vpop.f32.mrf.mxu1 }
 0x1c0   :  { %v718_v23 = vadd.f32 %v717_v14, %v705_v21  ;;  %v4445_v14 = vld [vmem:[#allocation6 + $0x314] sm:$0xf0]  ;;  %1213 = vmatpush.bf16.msra.mxu0 %v3389_v18  ;;  %v4442_v21 = vld [vmem:[#allocation6 + $0x304] sm:$0xf] }
 0x1c1   :  { %v3385_v15 = vor.u32 %v4445_v14, %v3384_v13 }
 0x1c2   :  { %v722_v25 = vmax.f32 %v718_v23, 0.0  ;;  %v3378_v23 = vld [vmem:[#allocation6 + $0x308] sm:$0xf0] }
 0x1c3   :  { %v678_v26 = vpop.f32.mrf.mxu2  ;;  %1187 = vmatpush.bf16.msrb.mxu2 %v3385_v15 }
 0x1c4   :  { %v724_v27 = vpack.c.bf16 %v722_v25, %v722_v25  ;;  %v679_v28 = vadd.f32 %v678_v26, %v505_v24  ;;  %v3381_v24 = vor.u32 %v4442_v21, %v3378_v23  ;;  %v3624_v25 = vld [vmem:[#allocation6 + $0x4f0] sm:$0xf]  ;;  %v4505_v26 = vld [vmem:[#allocation6 + $0x4f4] sm:$0xf0] }
 0x1c5   :  { %v693_v29 = vpop.f32.mrf.mxu3  ;;  %v706_v30 = vpop.f32.mrf.mxu0  ;;  %v4497_v23 = vld [vmem:[#allocation6 + $0x4b4] sm:$0xf0] }
 0x1c6   :  { %v692_v31 = vadd.f32 %v691_v19, %v679_v28  ;;  %946 = vmatmul.bf16.vlgmr.msra.gmra.mxu3 %v724_v27  ;;  %972 = vmatmul.bf16.vlgmr.msrb.gmra.mxu1 %v724_v27  ;;  %v3376_v19 = vld [vmem:[#allocation6 + $0x300] sm:$0xf]  ;;  %v4504_v27 = vld [vmem:[#allocation6 + $0x4f4] sm:$0xf]  ;;  %v3625_v28 = vor.u32 %v4505_v26, %v3624_v25  ;;  %v3626_v29 = vld [vmem:[#allocation6 + $0x4f8] sm:$0xf0] }
 0x1c7   :  { %v3377_v22 = vor.u32 %v4443_v20, %v3376_v19  ;;  %1214 = vmatpush.bf16.msra.mxu0 %v3381_v24  ;;  %v3616_v30 = vld [vmem:[#allocation6 + $0x4e0] sm:$0xf]  ;;  %v4496_v24 = vld [vmem:[#allocation6 + $0x4b4] sm:$0xf]  ;;  %v3594_v26 = vld [vmem:[#allocation6 + $0x4b8] sm:$0xf0] }
 0x1c8   :  { %v721_v32 = vmax.f32 %v692_v31, 0.0  ;;  %v4503_v31 = vld [vmem:[#allocation6 + $0x4e4] sm:$0xf0]  ;;  %1450 = vmatpush.bf16.msra.mxu3 %v3625_v28  ;;  %v3536_v28 = vld [vmem:[#allocation6 + $0x440] sm:$0xf] }
 0x1c9   :  { %1188 = vmatpush.bf16.msrb.mxu2 %v3377_v22  ;;  %v3617_v36 = vor.u32 %v4503_v31, %v3616_v30  ;;  %v3592_v22 = vld [vmem:[#allocation6 + $0x4b0] sm:$0xf]  ;;  %v4482_v30 = vld [vmem:[#allocation6 + $0x444] sm:$0xf] }
 0x1ca   :  { %v723_v33 = vpack.c.bf16 %v721_v32, %v721_v32  ;;  %v3629_v32 = vor.u32 %v4504_v27, %v3626_v29  ;;  %v3593_v25 = vor.u32 %v4497_v23, %v3592_v22  ;;  %v3597_v27 = vor.u32 %v4496_v24, %v3594_v26  ;;  %v4483_v29 = vld [vmem:[#allocation6 + $0x444] sm:$0xf0]  ;;  %v3688_v22 = vld [vmem:[#allocation6 + $0x570] sm:$0xf]  ;;  %v4521_v24 = vld [vmem:[#allocation6 + $0x574] sm:$0xf0] }
 0x1cb   :  { %v680_v34 = vpop.f32.mrf.mxu2  ;;  %v3537_v31 = vor.u32 %v4483_v29, %v3536_v28  ;;  %v3690_v26 = vld [vmem:[#allocation6 + $0x578] sm:$0xf0]  ;;  %v3689_v28 = vor.u32 %v4521_v24, %v3688_v22  ;;  %v4526_v24 = vld [vmem:[#allocation6 + $0x5a4] sm:$0xf] }
 0x1cc   :  { %933 = vmatmul.bf16.vlgmr.msra.gmra.mxu2 %v723_v33  ;;  %959 = vmatmul.bf16.vlgmr.msrb.gmra.mxu0 %v723_v33  ;;  %v4502_v33 = vld [vmem:[#allocation6 + $0x4e4] sm:$0xf]  ;;  %v3618_v34 = vld [vmem:[#allocation6 + $0x4e8] sm:$0xf0] }
 0x1cd   :  { %1476 = vmatpush.bf16.msrb.mxu1 %v3629_v32  ;;  %v3621_v40 = vor.u32 %v4502_v33, %v3618_v34  ;;  %1437 = vmatpush.bf16.msra.mxu2 %v3561_v41  ;;  %v3538_v32 = vld [vmem:[#allocation6 + $0x448] sm:$0xf0]  ;;  %v3584_v33 = vld [vmem:[#allocation6 + $0x4a0] sm:$0xf]  ;;  %v4495_v34 = vld [vmem:[#allocation6 + $0x4a4] sm:$0xf0] }
 0x1ce   :  { %1463 = vmatpush.bf16.msrb.mxu0 %v3565_v42  ;;  %1451 = vmatpush.bf16.msra.mxu3 %v3617_v36  ;;  %v3541_v35 = vor.u32 %v4482_v30, %v3538_v32  ;;  %v3585_v36 = vor.u32 %v4495_v34, %v3584_v33  ;;  %v4481_v41 = vld [vmem:[#allocation6 + $0x434] sm:$0xf0]  ;;  %v4480_v42 = vld [vmem:[#allocation6 + $0x434] sm:$0xf]  ;;  %v3736_v30 = vld [vmem:[#allocation6 + $0x5d0] sm:$0xf] }
 0x1cf   :  { %v3533_v45 = vor.u32 %v4480_v42, %v3530_v44  ;;  %v4532_v32 = vld [vmem:[#allocation6 + $0x5d4] sm:$0xf]  ;;  %v3738_v33 = vld [vmem:[#allocation6 + $0x5d8] sm:$0xf0]  ;;  %v3680_v34 = vld [vmem:[#allocation6 + $0x560] sm:$0xf] }
 0x1d0   :  { %v4531_v42 = vld [vmem:[#allocation6 + $0x5c4] sm:$0xf0]  ;;  %v3672_v44 = vld [vmem:[#allocation6 + $0x550] sm:$0xf] }
 0x1d1   :  { %1477 = vmatpush.bf16.msrb.mxu1 %v3621_v40  ;;  %1438 = vmatpush.bf16.msra.mxu2 %v3553_v49  ;;  %v3528_v40 = vld [vmem:[#allocation6 + $0x430] sm:$0xf]  ;;  %v4492_v49 = vld [vmem:[#allocation6 + $0x494] sm:$0xf] }
 0x1d2   :  { %1464 = vmatpush.bf16.msrb.mxu0 %v3557_v53  ;;  %1452 = vmatpush.bf16.msra.mxu3 %v3609_v52  ;;  %v3529_v43 = vor.u32 %v4481_v41, %v3528_v40  ;;  %v3581_v51 = vor.u32 %v4492_v49, %v3578_v50  ;;  %v3520_v52 = vld [vmem:[#allocation6 + $0x420] sm:$0xf]  ;;  %v4479_v53 = vld [vmem:[#allocation6 + $0x424] sm:$0xf0]  ;;  %v3685_v40 = vor.u32 %v4518_v37, %v3682_v38  ;;  %v3674_v49 = vld [vmem:[#allocation6 + $0x558] sm:$0xf0] }
 0x1d3   :  { %v3521_v55 = vor.u32 %v4479_v53, %v3520_v52  ;;  %v3728_v41 = vld [vmem:[#allocation6 + $0x5c0] sm:$0xf]  ;;  %v1015_v53 = vld [vmem:[#allocation7 + $0x6] sm:$0x3]  ;;  %v3706_v37 = vld [vmem:[#allocation6 + $0x598] sm:$0xf0] }
 0x1d5   :  { %1478 = vmatpush.bf16.msrb.mxu1 %v3613_v56  ;;  %1439 = vmatpush.bf16.msra.mxu2 %v3545_v63  ;;  %v3522_v56 = vld [vmem:[#allocation6 + $0x428] sm:$0xf0]  ;;  %v3573_v63 = vor.u32 %v4490_v60, %v3570_v62  ;;  %v1017_v62 = vperm.slane %v1015_v53, 0 }
 0x1d6   :  { %1465 = vmatpush.bf16.msrb.mxu0 %v3549_v0  ;;  %1453 = vmatpush.bf16.msra.mxu3 %v3601_v3  ;;  %v3525_v57 = vor.u32 %v4478_v54, %v3522_v56  ;;  %v3512_v0 = vld [vmem:[#allocation6 + $0x410] sm:$0xf]  ;;  %v4476_v3 = vld [vmem:[#allocation6 + $0x414] sm:$0xf]  ;;  %v3729_v54 = vor.u32 %v4531_v42, %v3728_v41  ;;  %v1018_v56 = vperm.slane %v1015_v53, 1 }
 0x1d7   :  { %v4510_v41 = vld [vmem:[#allocation6 + $0x524] sm:$0xf] }
 0x1d9   :  { %1479 = vmatpush.bf16.msrb.mxu1 %v3605_v4  ;;  %1440 = vmatpush.bf16.msra.mxu2 %v3537_v31  ;;  %v3514_v4 = vld [vmem:[#allocation6 + $0x418] sm:$0xf0]  ;;  %v4533_v31 = vld [vmem:[#allocation6 + $0x5d4] sm:$0xf0] }
 0x1da   :  { %1454 = vmatpush.bf16.msra.mxu3 %v3593_v25  ;;  %1466 = vmatpush.bf16.msrb.mxu0 %v3541_v35  ;;  %v4520_v25 = vld [vmem:[#allocation6 + $0x574] sm:$0xf]  ;;  %v4519_v35 = vld [vmem:[#allocation6 + $0x564] sm:$0xf0] }
 0x1db   :  { %v3693_v29 = vor.u32 %v4520_v25, %v3690_v26  ;;  %v3714_v25 = vld [vmem:[#allocation6 + $0x5a8] sm:$0xf0] }
 0x1dc   :  { %v3717_v26 = vor.u32 %v4526_v24, %v3714_v25  ;;  %v4550_v24 = vld [vmem:[#allocation6 + $0x664] sm:$0xf]  ;;  %v3810_v25 = vld [vmem:[#allocation6 + $0x668] sm:$0xf0] }
 0x1dd   :  { %1480 = vmatpush.bf16.msrb.mxu1 %v3597_v27  ;;  %1441 = vmatpush.bf16.msra.mxu2 %v3529_v43  ;;  %v3741_v43 = vor.u32 %v4532_v32, %v3738_v33  ;;  %v3704_v33 = vld [vmem:[#allocation6 + $0x590] sm:$0xf] }
 0x1de   :  { %1455 = vmatpush.bf16.msra.mxu3 %v3585_v36  ;;  %1467 = vmatpush.bf16.msrb.mxu0 %v3533_v45  ;;  %v3681_v36 = vor.u32 %v4519_v35, %v3680_v34  ;;  %v4517_v45 = vld [vmem:[#allocation6 + $0x554] sm:$0xf0] }
 0x1df   :  { %v3673_v50 = vor.u32 %v4517_v45, %v3672_v44  ;;  %v4525_v34 = vld [vmem:[#allocation6 + $0x594] sm:$0xf0]  ;;  %v3696_v45 = vld [vmem:[#allocation6 + $0x580] sm:$0xf] }
 0x1e0   :  { %v3705_v35 = vor.u32 %v4525_v34, %v3704_v33  ;;  %v4548_v33 = vld [vmem:[#allocation6 + $0x654] sm:$0xf]  ;;  %v4562_v34 = vld [vmem:[#allocation6 + $0x6c4] sm:$0xf] }
 0x1e1   :  { %1481 = vmatpush.bf16.msrb.mxu1 %v3589_v39  ;;  %1442 = vmatpush.bf16.msra.mxu2 %v3521_v55  ;;  %v3737_v39 = vor.u32 %v4533_v31, %v3736_v30  ;;  %v3658_v31 = vld [vmem:[#allocation6 + $0x538] sm:$0xf0] }
 0x1e2   :  { %1456 = vmatpush.bf16.msra.mxu3 %v3577_v48  ;;  %1468 = vmatpush.bf16.msrb.mxu0 %v3525_v57  ;;  %v3730_v48 = vld [vmem:[#allocation6 + $0x5c8] sm:$0xf0] }
 0x1e3   :  { %v3733_v55 = vor.u32 %v4530_v47, %v3730_v48  ;;  %v4522_v47 = vld [vmem:[#allocation6 + $0x584] sm:$0xf] }
 0x1e5   :  { %1482 = vmatpush.bf16.msrb.mxu1 %v3581_v51  ;;  %v3677_v51 = vor.u32 %v4516_v46, %v3674_v49  ;;  %v4523_v46 = vld [vmem:[#allocation6 + $0x584] sm:$0xf0]  ;;  %v3698_v49 = vld [vmem:[#allocation6 + $0x588] sm:$0xf0] }
 0x1e6   :  { %1457 = vmatpush.bf16.msra.mxu3 %v3569_v61  ;;  %v3697_v48 = vor.u32 %v4523_v46, %v3696_v45 }
 0x1e9   :  { %1483 = vmatpush.bf16.msrb.mxu1 %v3573_v63 }
 0x243   :  { %v973_v1 = vpop.f32.mrf.mxu1 }
 0x249   :  { %v947_v6 = vpop.f32.mrf.mxu3  ;;  %v960_v7 = vpop.f32.mrf.mxu0 }
 0x24a   :  { %v961_v8 = vadd.f32 %v960_v7, %v762_v5  ;;  %v3517_v5 = vor.u32 %v4476_v3, %v3514_v4  ;;  %v4475_v7 = vld [vmem:[#allocation6 + $0x404] sm:$0xf0] }
 0x24b   :  { %v975_v9 = vpop.f32.mrf.mxu1 }
 0x24c   :  { %v974_v10 = vadd.f32 %v973_v1, %v961_v8  ;;  %v4477_v1 = vld [vmem:[#allocation6 + $0x414] sm:$0xf0]  ;;  %1469 = vmatpush.bf16.msrb.mxu0 %v3517_v5  ;;  %v4474_v8 = vld [vmem:[#allocation6 + $0x404] sm:$0xf] }
 0x24d   :  { %v3513_v2 = vor.u32 %v4477_v1, %v3512_v0 }
 0x24e   :  { %v978_v12 = vmax.f32 %v974_v10, 0.0  ;;  %v3506_v10 = vld [vmem:[#allocation6 + $0x408] sm:$0xf0] }
 0x24f   :  { %v934_v13 = vpop.f32.mrf.mxu2  ;;  %1443 = vmatpush.bf16.msra.mxu2 %v3513_v2 }
 0x250   :  { %v980_v14 = vpack.c.bf16 %v978_v12, %v978_v12  ;;  %v935_v15 = vadd.f32 %v934_v13, %v761_v11  ;;  %v3509_v11 = vor.u32 %v4474_v8, %v3506_v10  ;;  %v3752_v12 = vld [vmem:[#allocation6 + $0x5f0] sm:$0xf]  ;;  %v4537_v13 = vld [vmem:[#allocation6 + $0x5f4] sm:$0xf0] }
 0x251   :  { %v949_v16 = vpop.f32.mrf.mxu3  ;;  %v962_v17 = vpop.f32.mrf.mxu0  ;;  %v4529_v10 = vld [vmem:[#allocation6 + $0x5b4] sm:$0xf0] }
 0x252   :  { %v948_v18 = vadd.f32 %v947_v6, %v935_v15  ;;  %1202 = vmatmul.bf16.vlgmr.msrb.gmra.mxu3 %v980_v14  ;;  %1228 = vmatmul.bf16.vlgmr.msra.gmra.mxu1 %v980_v14  ;;  %v3504_v6 = vld [vmem:[#allocation6 + $0x400] sm:$0xf]  ;;  %v4536_v14 = vld [vmem:[#allocation6 + $0x5f4] sm:$0xf]  ;;  %v3753_v15 = vor.u32 %v4537_v13, %v3752_v12  ;;  %v3754_v16 = vld [vmem:[#allocation6 + $0x5f8] sm:$0xf0] }
 0x253   :  { %v3505_v9 = vor.u32 %v4475_v7, %v3504_v6  ;;  %1470 = vmatpush.bf16.msrb.mxu0 %v3509_v11  ;;  %v3744_v17 = vld [vmem:[#allocation6 + $0x5e0] sm:$0xf]  ;;  %v4528_v11 = vld [vmem:[#allocation6 + $0x5b4] sm:$0xf]  ;;  %v3722_v13 = vld [vmem:[#allocation6 + $0x5b8] sm:$0xf0] }
 0x254   :  { %v977_v19 = vmax.f32 %v948_v18, 0.0  ;;  %v4535_v18 = vld [vmem:[#allocation6 + $0x5e4] sm:$0xf0]  ;;  %1706 = vmatpush.bf16.msrb.mxu3 %v3753_v15  ;;  %v3664_v15 = vld [vmem:[#allocation6 + $0x540] sm:$0xf] }
 0x255   :  { %1444 = vmatpush.bf16.msra.mxu2 %v3505_v9  ;;  %v3745_v23 = vor.u32 %v4535_v18, %v3744_v17  ;;  %v3720_v9 = vld [vmem:[#allocation6 + $0x5b0] sm:$0xf]  ;;  %v4514_v17 = vld [vmem:[#allocation6 + $0x544] sm:$0xf] }
 0x256   :  { %v979_v20 = vpack.c.bf16 %v977_v19, %v977_v19  ;;  %v3757_v19 = vor.u32 %v4536_v14, %v3754_v16  ;;  %v3721_v12 = vor.u32 %v4529_v10, %v3720_v9  ;;  %v3725_v14 = vor.u32 %v4528_v11, %v3722_v13  ;;  %v4515_v16 = vld [vmem:[#allocation6 + $0x544] sm:$0xf0]  ;;  %v3816_v9 = vld [vmem:[#allocation6 + $0x670] sm:$0xf]  ;;  %v4553_v11 = vld [vmem:[#allocation6 + $0x674] sm:$0xf0] }
 0x257   :  { %v936_v21 = vpop.f32.mrf.mxu2  ;;  %v3665_v18 = vor.u32 %v4515_v16, %v3664_v15  ;;  %v3818_v13 = vld [vmem:[#allocation6 + $0x678] sm:$0xf0]  ;;  %v3817_v15 = vor.u32 %v4553_v11, %v3816_v9  ;;  %v4558_v11 = vld [vmem:[#allocation6 + $0x6a4] sm:$0xf] }
 0x258   :  { %1189 = vmatmul.bf16.vlgmr.msrb.gmra.mxu2 %v979_v20  ;;  %1215 = vmatmul.bf16.vlgmr.msra.gmra.mxu0 %v979_v20  ;;  %v4534_v20 = vld [vmem:[#allocation6 + $0x5e4] sm:$0xf]  ;;  %v3746_v21 = vld [vmem:[#allocation6 + $0x5e8] sm:$0xf0] }
 0x259   :  { %1732 = vmatpush.bf16.msra.mxu1 %v3757_v19  ;;  %v3749_v27 = vor.u32 %v4534_v20, %v3746_v21  ;;  %1693 = vmatpush.bf16.msrb.mxu2 %v3689_v28  ;;  %v3666_v19 = vld [vmem:[#allocation6 + $0x548] sm:$0xf0]  ;;  %v3712_v20 = vld [vmem:[#allocation6 + $0x5a0] sm:$0xf]  ;;  %v4527_v21 = vld [vmem:[#allocation6 + $0x5a4] sm:$0xf0] }
 0x25a   :  { %1719 = vmatpush.bf16.msra.mxu0 %v3693_v29  ;;  %1707 = vmatpush.bf16.msrb.mxu3 %v3745_v23  ;;  %v3669_v22 = vor.u32 %v4514_v17, %v3666_v19  ;;  %v3713_v23 = vor.u32 %v4527_v21, %v3712_v20  ;;  %v4513_v28 = vld [vmem:[#allocation6 + $0x534] sm:$0xf0]  ;;  %v4512_v29 = vld [vmem:[#allocation6 + $0x534] sm:$0xf]  ;;  %v3864_v17 = vld [vmem:[#allocation6 + $0x6d0] sm:$0xf] }
 0x25b   :  { %v3661_v32 = vor.u32 %v4512_v29, %v3658_v31  ;;  %v4564_v19 = vld [vmem:[#allocation6 + $0x6d4] sm:$0xf]  ;;  %v3866_v20 = vld [vmem:[#allocation6 + $0x6d8] sm:$0xf0]  ;;  %v3808_v21 = vld [vmem:[#allocation6 + $0x660] sm:$0xf] }
 0x25c   :  { %v4563_v29 = vld [vmem:[#allocation6 + $0x6c4] sm:$0xf0]  ;;  %v3800_v31 = vld [vmem:[#allocation6 + $0x650] sm:$0xf] }
 0x25d   :  { %1733 = vmatpush.bf16.msra.mxu1 %v3749_v27  ;;  %1694 = vmatpush.bf16.msrb.mxu2 %v3681_v36  ;;  %v3656_v27 = vld [vmem:[#allocation6 + $0x530] sm:$0xf]  ;;  %v4524_v36 = vld [vmem:[#allocation6 + $0x594] sm:$0xf] }
 0x25e   :  { %1720 = vmatpush.bf16.msra.mxu0 %v3685_v40  ;;  %1708 = vmatpush.bf16.msrb.mxu3 %v3737_v39  ;;  %v3657_v30 = vor.u32 %v4513_v28, %v3656_v27  ;;  %v3709_v38 = vor.u32 %v4524_v36, %v3706_v37  ;;  %v3648_v39 = vld [vmem:[#allocation6 + $0x520] sm:$0xf]  ;;  %v4511_v40 = vld [vmem:[#allocation6 + $0x524] sm:$0xf0]  ;;  %v3813_v27 = vor.u32 %v4550_v24, %v3810_v25  ;;  %v3802_v36 = vld [vmem:[#allocation6 + $0x658] sm:$0xf0] }
 0x25f   :  { %v3649_v42 = vor.u32 %v4511_v40, %v3648_v39  ;;  %v3856_v28 = vld [vmem:[#allocation6 + $0x6c0] sm:$0xf]  ;;  %v1271_v40 = vld [vmem:[#allocation7 + $0x8] sm:$0x3]  ;;  %v3834_v24 = vld [vmem:[#allocation6 + $0x698] sm:$0xf0] }
 0x261   :  { %1734 = vmatpush.bf16.msra.mxu1 %v3741_v43  ;;  %1695 = vmatpush.bf16.msrb.mxu2 %v3673_v50  ;;  %v3650_v43 = vld [vmem:[#allocation6 + $0x528] sm:$0xf0]  ;;  %v3701_v50 = vor.u32 %v4522_v47, %v3698_v49  ;;  %v1273_v49 = vperm.slane %v1271_v40, 0 }
 0x262   :  { %1721 = vmatpush.bf16.msra.mxu0 %v3677_v51  ;;  %1709 = vmatpush.bf16.msrb.mxu3 %v3729_v54  ;;  %v3653_v44 = vor.u32 %v4510_v41, %v3650_v43  ;;  %v3640_v51 = vld [vmem:[#allocation6 + $0x510] sm:$0xf]  ;;  %v4508_v54 = vld [vmem:[#allocation6 + $0x514] sm:$0xf]  ;;  %v3857_v41 = vor.u32 %v4563_v29, %v3856_v28  ;;  %v1274_v43 = vperm.slane %v1271_v40, 1 }
 0x263   :  { %v4542_v28 = vld [vmem:[#allocation6 + $0x624] sm:$0xf] }
 0x265   :  { %1735 = vmatpush.bf16.msra.mxu1 %v3733_v55  ;;  %1696 = vmatpush.bf16.msrb.mxu2 %v3665_v18  ;;  %v3642_v55 = vld [vmem:[#allocation6 + $0x518] sm:$0xf0]  ;;  %v4565_v18 = vld [vmem:[#allocation6 + $0x6d4] sm:$0xf0] }
 0x266   :  { %1710 = vmatpush.bf16.msrb.mxu3 %v3721_v12  ;;  %1722 = vmatpush.bf16.msra.mxu0 %v3669_v22  ;;  %v4552_v12 = vld [vmem:[#allocation6 + $0x674] sm:$0xf]  ;;  %v4551_v22 = vld [vmem:[#allocation6 + $0x664] sm:$0xf0] }
 0x267   :  { %v3821_v16 = vor.u32 %v4552_v12, %v3818_v13  ;;  %v3842_v12 = vld [vmem:[#allocation6 + $0x6a8] sm:$0xf0] }
 0x268   :  { %v3845_v13 = vor.u32 %v4558_v11, %v3842_v12  ;;  %v4582_v11 = vld [vmem:[#allocation6 + $0x764] sm:$0xf]  ;;  %v3938_v12 = vld [vmem:[#allocation6 + $0x768] sm:$0xf0] }
 0x269   :  { %1736 = vmatpush.bf16.msra.mxu1 %v3725_v14  ;;  %1697 = vmatpush.bf16.msrb.mxu2 %v3657_v30  ;;  %v3869_v30 = vor.u32 %v4564_v19, %v3866_v20  ;;  %v3832_v20 = vld [vmem:[#allocation6 + $0x690] sm:$0xf] }
 0x26a   :  { %1711 = vmatpush.bf16.msrb.mxu3 %v3713_v23  ;;  %1723 = vmatpush.bf16.msra.mxu0 %v3661_v32  ;;  %v3809_v23 = vor.u32 %v4551_v22, %v3808_v21  ;;  %v4549_v32 = vld [vmem:[#allocation6 + $0x654] sm:$0xf0] }
 0x26b   :  { %v3801_v37 = vor.u32 %v4549_v32, %v3800_v31  ;;  %v4557_v21 = vld [vmem:[#allocation6 + $0x694] sm:$0xf0]  ;;  %v3824_v32 = vld [vmem:[#allocation6 + $0x680] sm:$0xf] }
 0x26c   :  { %v3833_v22 = vor.u32 %v4557_v21, %v3832_v20  ;;  %v4580_v20 = vld [vmem:[#allocation6 + $0x754] sm:$0xf]  ;;  %v4594_v21 = vld [vmem:[#allocation6 + $0x7c4] sm:$0xf] }
 0x26d   :  { %1737 = vmatpush.bf16.msra.mxu1 %v3717_v26  ;;  %1698 = vmatpush.bf16.msrb.mxu2 %v3649_v42  ;;  %v3865_v26 = vor.u32 %v4565_v18, %v3864_v17  ;;  %v3786_v18 = vld [vmem:[#allocation6 + $0x638] sm:$0xf0] }
 0x26e   :  { %1712 = vmatpush.bf16.msrb.mxu3 %v3705_v35  ;;  %1724 = vmatpush.bf16.msra.mxu0 %v3653_v44  ;;  %v3858_v35 = vld [vmem:[#allocation6 + $0x6c8] sm:$0xf0] }
 0x26f   :  { %v3861_v42 = vor.u32 %v4562_v34, %v3858_v35  ;;  %v4554_v34 = vld [vmem:[#allocation6 + $0x684] sm:$0xf] }
 0x271   :  { %1738 = vmatpush.bf16.msra.mxu1 %v3709_v38  ;;  %v3805_v38 = vor.u32 %v4548_v33, %v3802_v36  ;;  %v4555_v33 = vld [vmem:[#allocation6 + $0x684] sm:$0xf0]  ;;  %v3826_v36 = vld [vmem:[#allocation6 + $0x688] sm:$0xf0] }
 0x272   :  { %1713 = vmatpush.bf16.msrb.mxu3 %v3697_v48  ;;  %v3825_v35 = vor.u32 %v4555_v33, %v3824_v32 }
 0x275   :  { %1739 = vmatpush.bf16.msra.mxu1 %v3701_v50 }
 0x2cf   :  { %v1229_v52 = vpop.f32.mrf.mxu1 }
 0x2d5   :  { %v1203_v57 = vpop.f32.mrf.mxu3  ;;  %v1216_v58 = vpop.f32.mrf.mxu0 }
 0x2d6   :  { %v1217_v59 = vadd.f32 %v1216_v58, %v1018_v56  ;;  %v3645_v56 = vor.u32 %v4508_v54, %v3642_v55  ;;  %v4507_v58 = vld [vmem:[#allocation6 + $0x504] sm:$0xf0] }
 0x2d7   :  { %v1231_v60 = vpop.f32.mrf.mxu1 }
 0x2d8   :  { %v1230_v61 = vadd.f32 %v1229_v52, %v1217_v59  ;;  %v4509_v52 = vld [vmem:[#allocation6 + $0x514] sm:$0xf0]  ;;  %1725 = vmatpush.bf16.msra.mxu0 %v3645_v56  ;;  %v4506_v59 = vld [vmem:[#allocation6 + $0x504] sm:$0xf] }
 0x2d9   :  { %v3641_v53 = vor.u32 %v4509_v52, %v3640_v51 }
 0x2da   :  { %v1234_v63 = vmax.f32 %v1230_v61, 0.0  ;;  %v3634_v61 = vld [vmem:[#allocation6 + $0x508] sm:$0xf0] }
 0x2db   :  { %v1190_v0 = vpop.f32.mrf.mxu2  ;;  %1699 = vmatpush.bf16.msrb.mxu2 %v3641_v53 }
 0x2dc   :  { %v1236_v1 = vpack.c.bf16 %v1234_v63, %v1234_v63  ;;  %v1191_v2 = vadd.f32 %v1190_v0, %v1017_v62  ;;  %v3637_v62 = vor.u32 %v4506_v59, %v3634_v61  ;;  %v3880_v63 = vld [vmem:[#allocation6 + $0x6f0] sm:$0xf]  ;;  %v4569_v0 = vld [vmem:[#allocation6 + $0x6f4] sm:$0xf0] }
 0x2dd   :  { %v1205_v3 = vpop.f32.mrf.mxu3  ;;  %v1218_v4 = vpop.f32.mrf.mxu0  ;;  %v4561_v61 = vld [vmem:[#allocation6 + $0x6b4] sm:$0xf0] }
 0x2de   :  { %v1204_v5 = vadd.f32 %v1203_v57, %v1191_v2  ;;  %1458 = vmatmul.bf16.vlgmr.msra.gmra.mxu3 %v1236_v1  ;;  %1484 = vmatmul.bf16.vlgmr.msrb.gmra.mxu1 %v1236_v1  ;;  %v3632_v57 = vld [vmem:[#allocation6 + $0x500] sm:$0xf]  ;;  %v4568_v1 = vld [vmem:[#allocation6 + $0x6f4] sm:$0xf]  ;;  %v3881_v2 = vor.u32 %v4569_v0, %v3880_v63  ;;  %v3882_v3 = vld [vmem:[#allocation6 + $0x6f8] sm:$0xf0] }
 0x2df   :  { %v3633_v60 = vor.u32 %v4507_v58, %v3632_v57  ;;  %1726 = vmatpush.bf16.msra.mxu0 %v3637_v62  ;;  %v3872_v4 = vld [vmem:[#allocation6 + $0x6e0] sm:$0xf]  ;;  %v4560_v62 = vld [vmem:[#allocation6 + $0x6b4] sm:$0xf]  ;;  %v3850_v0 = vld [vmem:[#allocation6 + $0x6b8] sm:$0xf0] }
 0x2e0   :  { %v1233_v6 = vmax.f32 %v1204_v5, 0.0  ;;  %v4567_v5 = vld [vmem:[#allocation6 + $0x6e4] sm:$0xf0]  ;;  %1962 = vmatpush.bf16.msra.mxu3 %v3881_v2  ;;  %v3792_v2 = vld [vmem:[#allocation6 + $0x640] sm:$0xf] }
 0x2e1   :  { %1700 = vmatpush.bf16.msrb.mxu2 %v3633_v60  ;;  %v3873_v10 = vor.u32 %v4567_v5, %v3872_v4  ;;  %v3848_v60 = vld [vmem:[#allocation6 + $0x6b0] sm:$0xf]  ;;  %v4546_v4 = vld [vmem:[#allocation6 + $0x644] sm:$0xf] }
 0x2e2   :  { %v1235_v7 = vpack.c.bf16 %v1233_v6, %v1233_v6  ;;  %v3885_v6 = vor.u32 %v4568_v1, %v3882_v3  ;;  %v3849_v63 = vor.u32 %v4561_v61, %v3848_v60  ;;  %v3853_v1 = vor.u32 %v4560_v62, %v3850_v0  ;;  %v4547_v3 = vld [vmem:[#allocation6 + $0x644] sm:$0xf0]  ;;  %v3944_v60 = vld [vmem:[#allocation6 + $0x770] sm:$0xf]  ;;  %v4585_v62 = vld [vmem:[#allocation6 + $0x774] sm:$0xf0] }
 0x2e3   :  { %v1192_v8 = vpop.f32.mrf.mxu2  ;;  %v3793_v5 = vor.u32 %v4547_v3, %v3792_v2  ;;  %v3946_v0 = vld [vmem:[#allocation6 + $0x778] sm:$0xf0]  ;;  %v3945_v2 = vor.u32 %v4585_v62, %v3944_v60  ;;  %v4590_v62 = vld [vmem:[#allocation6 + $0x7a4] sm:$0xf] }
 0x2e4   :  { %1445 = vmatmul.bf16.vlgmr.msra.gmra.mxu2 %v1235_v7  ;;  %1471 = vmatmul.bf16.vlgmr.msrb.gmra.mxu0 %v1235_v7  ;;  %v4566_v7 = vld [vmem:[#allocation6 + $0x6e4] sm:$0xf]  ;;  %v3874_v8 = vld [vmem:[#allocation6 + $0x6e8] sm:$0xf0] }
 0x2e5   :  { %1988 = vmatpush.bf16.msrb.mxu1 %v3885_v6  ;;  %v3877_v14 = vor.u32 %v4566_v7, %v3874_v8  ;;  %1949 = vmatpush.bf16.msra.mxu2 %v3817_v15  ;;  %v3794_v6 = vld [vmem:[#allocation6 + $0x648] sm:$0xf0]  ;;  %v3840_v7 = vld [vmem:[#allocation6 + $0x6a0] sm:$0xf]  ;;  %v4559_v8 = vld [vmem:[#allocation6 + $0x6a4] sm:$0xf0] }
 0x2e6   :  { %1975 = vmatpush.bf16.msrb.mxu0 %v3821_v16  ;;  %1963 = vmatpush.bf16.msra.mxu3 %v3873_v10  ;;  %v3797_v9 = vor.u32 %v4546_v4, %v3794_v6  ;;  %v3841_v10 = vor.u32 %v4559_v8, %v3840_v7  ;;  %v4545_v15 = vld [vmem:[#allocation6 + $0x634] sm:$0xf0]  ;;  %v4544_v16 = vld [vmem:[#allocation6 + $0x634] sm:$0xf]  ;;  %v3992_v4 = vld [vmem:[#allocation6 + $0x7d0] sm:$0xf] }
 0x2e7   :  { %v3789_v19 = vor.u32 %v4544_v16, %v3786_v18  ;;  %v4596_v6 = vld [vmem:[#allocation6 + $0x7d4] sm:$0xf]  ;;  %v3994_v7 = vld [vmem:[#allocation6 + $0x7d8] sm:$0xf0]  ;;  %v3936_v8 = vld [vmem:[#allocation6 + $0x760] sm:$0xf] }
 0x2e8   :  { %v4595_v16 = vld [vmem:[#allocation6 + $0x7c4] sm:$0xf0]  ;;  %v3928_v18 = vld [vmem:[#allocation6 + $0x750] sm:$0xf] }
 0x2e9   :  { %1989 = vmatpush.bf16.msrb.mxu1 %v3877_v14  ;;  %1950 = vmatpush.bf16.msra.mxu2 %v3809_v23  ;;  %v3784_v14 = vld [vmem:[#allocation6 + $0x630] sm:$0xf]  ;;  %v4556_v23 = vld [vmem:[#allocation6 + $0x694] sm:$0xf] }
 0x2ea   :  { %1976 = vmatpush.bf16.msrb.mxu0 %v3813_v27  ;;  %1964 = vmatpush.bf16.msra.mxu3 %v3865_v26  ;;  %v3785_v17 = vor.u32 %v4545_v15, %v3784_v14  ;;  %v3837_v25 = vor.u32 %v4556_v23, %v3834_v24  ;;  %v3776_v26 = vld [vmem:[#allocation6 + $0x620] sm:$0xf]  ;;  %v4543_v27 = vld [vmem:[#allocation6 + $0x624] sm:$0xf0]  ;;  %v3941_v14 = vor.u32 %v4582_v11, %v3938_v12  ;;  %v3930_v23 = vld [vmem:[#allocation6 + $0x758] sm:$0xf0] }
 0x2eb   :  { %v3777_v29 = vor.u32 %v4543_v27, %v3776_v26  ;;  %v3984_v15 = vld [vmem:[#allocation6 + $0x7c0] sm:$0xf]  ;;  %v1527_v27 = vld [vmem:[#allocation7 + $0xa] sm:$0x3]  ;;  %v3962_v11 = vld [vmem:[#allocation6 + $0x798] sm:$0xf0] }
 0x2ed   :  { %1990 = vmatpush.bf16.msrb.mxu1 %v3869_v30  ;;  %1951 = vmatpush.bf16.msra.mxu2 %v3801_v37  ;;  %v3778_v30 = vld [vmem:[#allocation6 + $0x628] sm:$0xf0]  ;;  %v3829_v37 = vor.u32 %v4554_v34, %v3826_v36  ;;  %v1529_v36 = vperm.slane %v1527_v27, 0 }
 0x2ee   :  { %1977 = vmatpush.bf16.msrb.mxu0 %v3805_v38  ;;  %1965 = vmatpush.bf16.msra.mxu3 %v3857_v41  ;;  %v3781_v31 = vor.u32 %v4542_v28, %v3778_v30  ;;  %v3768_v38 = vld [vmem:[#allocation6 + $0x610] sm:$0xf]  ;;  %v4540_v41 = vld [vmem:[#allocation6 + $0x614] sm:$0xf]  ;;  %v3985_v28 = vor.u32 %v4595_v16, %v3984_v15  ;;  %v1530_v30 = vperm.slane %v1527_v27, 1 }
 0x2ef   :  { %v4574_v15 = vld [vmem:[#allocation6 + $0x724] sm:$0xf] }
 0x2f1   :  { %1991 = vmatpush.bf16.msrb.mxu1 %v3861_v42  ;;  %1952 = vmatpush.bf16.msra.mxu2 %v3793_v5  ;;  %v3770_v42 = vld [vmem:[#allocation6 + $0x618] sm:$0xf0]  ;;  %v4597_v5 = vld [vmem:[#allocation6 + $0x7d4] sm:$0xf0] }
 0x2f2   :  { %1966 = vmatpush.bf16.msra.mxu3 %v3849_v63  ;;  %1978 = vmatpush.bf16.msrb.mxu0 %v3797_v9  ;;  %v4584_v63 = vld [vmem:[#allocation6 + $0x774] sm:$0xf]  ;;  %v4583_v9 = vld [vmem:[#allocation6 + $0x764] sm:$0xf0] }
 0x2f3   :  { %v3949_v3 = vor.u32 %v4584_v63, %v3946_v0  ;;  %v3970_v63 = vld [vmem:[#allocation6 + $0x7a8] sm:$0xf0] }
 0x2f4   :  { %v3973_v0 = vor.u32 %v4590_v62, %v3970_v63  ;;  %v4614_v62 = vld [vmem:[#allocation6 + $0x864] sm:$0xf]  ;;  %v4066_v63 = vld [vmem:[#allocation6 + $0x868] sm:$0xf0] }
 0x2f5   :  { %1992 = vmatpush.bf16.msrb.mxu1 %v3853_v1  ;;  %1953 = vmatpush.bf16.msra.mxu2 %v3785_v17  ;;  %v3997_v17 = vor.u32 %v4596_v6, %v3994_v7  ;;  %v3960_v7 = vld [vmem:[#allocation6 + $0x790] sm:$0xf] }
 0x2f6   :  { %1967 = vmatpush.bf16.msra.mxu3 %v3841_v10  ;;  %1979 = vmatpush.bf16.msrb.mxu0 %v3789_v19  ;;  %v3937_v10 = vor.u32 %v4583_v9, %v3936_v8  ;;  %v4581_v19 = vld [vmem:[#allocation6 + $0x754] sm:$0xf0] }
 0x2f7   :  { %v3929_v24 = vor.u32 %v4581_v19, %v3928_v18  ;;  %v4589_v8 = vld [vmem:[#allocation6 + $0x794] sm:$0xf0]  ;;  %v3952_v19 = vld [vmem:[#allocation6 + $0x780] sm:$0xf] }
 0x2f8   :  { %v3961_v9 = vor.u32 %v4589_v8, %v3960_v7  ;;  %v4612_v7 = vld [vmem:[#allocation6 + $0x854] sm:$0xf]  ;;  %v4626_v8 = vld [vmem:[#allocation6 + $0x8c4] sm:$0xf] }
 0x2f9   :  { %1993 = vmatpush.bf16.msrb.mxu1 %v3845_v13  ;;  %1954 = vmatpush.bf16.msra.mxu2 %v3777_v29  ;;  %v3993_v13 = vor.u32 %v4597_v5, %v3992_v4  ;;  %v3914_v5 = vld [vmem:[#allocation6 + $0x738] sm:$0xf0] }
 0x2fa   :  { %1968 = vmatpush.bf16.msra.mxu3 %v3833_v22  ;;  %1980 = vmatpush.bf16.msrb.mxu0 %v3781_v31  ;;  %v3986_v22 = vld [vmem:[#allocation6 + $0x7c8] sm:$0xf0] }
 0x2fb   :  { %v3989_v29 = vor.u32 %v4594_v21, %v3986_v22  ;;  %v4586_v21 = vld [vmem:[#allocation6 + $0x784] sm:$0xf] }
 0x2fd   :  { %1994 = vmatpush.bf16.msrb.mxu1 %v3837_v25  ;;  %v3933_v25 = vor.u32 %v4580_v20, %v3930_v23  ;;  %v4587_v20 = vld [vmem:[#allocation6 + $0x784] sm:$0xf0]  ;;  %v3954_v23 = vld [vmem:[#allocation6 + $0x788] sm:$0xf0] }
 0x2fe   :  { %1969 = vmatpush.bf16.msra.mxu3 %v3825_v35  ;;  %v3953_v22 = vor.u32 %v4587_v20, %v3952_v19 }
 0x301   :  { %1995 = vmatpush.bf16.msrb.mxu1 %v3829_v37 }
 0x35b   :  { %v1485_v39 = vpop.f32.mrf.mxu1 }
 0x361   :  { %v1459_v44 = vpop.f32.mrf.mxu3  ;;  %v1472_v45 = vpop.f32.mrf.mxu0 }
 0x362   :  { %v1473_v46 = vadd.f32 %v1472_v45, %v1274_v43  ;;  %v3773_v43 = vor.u32 %v4540_v41, %v3770_v42  ;;  %v4539_v45 = vld [vmem:[#allocation6 + $0x604] sm:$0xf0] }
 0x363   :  { %v1487_v47 = vpop.f32.mrf.mxu1 }
 0x364   :  { %v1486_v48 = vadd.f32 %v1485_v39, %v1473_v46  ;;  %v4541_v39 = vld [vmem:[#allocation6 + $0x614] sm:$0xf0]  ;;  %1981 = vmatpush.bf16.msrb.mxu0 %v3773_v43  ;;  %v4538_v46 = vld [vmem:[#allocation6 + $0x604] sm:$0xf] }
 0x365   :  { %v3769_v40 = vor.u32 %v4541_v39, %v3768_v38 }
 0x366   :  { %v1490_v50 = vmax.f32 %v1486_v48, 0.0  ;;  %v3762_v48 = vld [vmem:[#allocation6 + $0x608] sm:$0xf0] }
 0x367   :  { %v1446_v51 = vpop.f32.mrf.mxu2  ;;  %1955 = vmatpush.bf16.msra.mxu2 %v3769_v40 }
 0x368   :  { %v1492_v52 = vpack.c.bf16 %v1490_v50, %v1490_v50  ;;  %v1447_v53 = vadd.f32 %v1446_v51, %v1273_v49  ;;  %v3765_v49 = vor.u32 %v4538_v46, %v3762_v48  ;;  %v4008_v50 = vld [vmem:[#allocation6 + $0x7f0] sm:$0xf]  ;;  %v4601_v51 = vld [vmem:[#allocation6 + $0x7f4] sm:$0xf0] }
 0x369   :  { %v1461_v54 = vpop.f32.mrf.mxu3  ;;  %v1474_v55 = vpop.f32.mrf.mxu0  ;;  %v4593_v48 = vld [vmem:[#allocation6 + $0x7b4] sm:$0xf0] }
 0x36a   :  { %v1460_v56 = vadd.f32 %v1459_v44, %v1447_v53  ;;  %1714 = vmatmul.bf16.vlgmr.msrb.gmra.mxu3 %v1492_v52  ;;  %1740 = vmatmul.bf16.vlgmr.msra.gmra.mxu1 %v1492_v52  ;;  %v3760_v44 = vld [vmem:[#allocation6 + $0x600] sm:$0xf]  ;;  %v4600_v52 = vld [vmem:[#allocation6 + $0x7f4] sm:$0xf]  ;;  %v4009_v53 = vor.u32 %v4601_v51, %v4008_v50  ;;  %v4010_v54 = vld [vmem:[#allocation6 + $0x7f8] sm:$0xf0] }
 0x36b   :  { %v3761_v47 = vor.u32 %v4539_v45, %v3760_v44  ;;  %1982 = vmatpush.bf16.msrb.mxu0 %v3765_v49  ;;  %v4000_v55 = vld [vmem:[#allocation6 + $0x7e0] sm:$0xf]  ;;  %v4592_v49 = vld [vmem:[#allocation6 + $0x7b4] sm:$0xf]  ;;  %v3978_v51 = vld [vmem:[#allocation6 + $0x7b8] sm:$0xf0] }
 0x36c   :  { %v1489_v57 = vmax.f32 %v1460_v56, 0.0  ;;  %v4599_v56 = vld [vmem:[#allocation6 + $0x7e4] sm:$0xf0]  ;;  %2218 = vmatpush.bf16.msrb.mxu3 %v4009_v53  ;;  %v3920_v53 = vld [vmem:[#allocation6 + $0x740] sm:$0xf] }
 0x36d   :  { %1956 = vmatpush.bf16.msra.mxu2 %v3761_v47  ;;  %v4001_v61 = vor.u32 %v4599_v56, %v4000_v55  ;;  %v3976_v47 = vld [vmem:[#allocation6 + $0x7b0] sm:$0xf]  ;;  %v4578_v55 = vld [vmem:[#allocation6 + $0x744] sm:$0xf] }
 0x36e   :  { %v1491_v58 = vpack.c.bf16 %v1489_v57, %v1489_v57  ;;  %v4013_v57 = vor.u32 %v4600_v52, %v4010_v54  ;;  %v3977_v50 = vor.u32 %v4593_v48, %v3976_v47  ;;  %v3981_v52 = vor.u32 %v4592_v49, %v3978_v51  ;;  %v4579_v54 = vld [vmem:[#allocation6 + $0x744] sm:$0xf0]  ;;  %v4072_v47 = vld [vmem:[#allocation6 + $0x870] sm:$0xf]  ;;  %v4617_v49 = vld [vmem:[#allocation6 + $0x874] sm:$0xf0] }
 0x36f   :  { %v1448_v59 = vpop.f32.mrf.mxu2  ;;  %v3921_v56 = vor.u32 %v4579_v54, %v3920_v53  ;;  %v4074_v51 = vld [vmem:[#allocation6 + $0x878] sm:$0xf0]  ;;  %v4073_v53 = vor.u32 %v4617_v49, %v4072_v47  ;;  %v4622_v49 = vld [vmem:[#allocation6 + $0x8a4] sm:$0xf] }
 0x370   :  { %1701 = vmatmul.bf16.vlgmr.msrb.gmra.mxu2 %v1491_v58  ;;  %1727 = vmatmul.bf16.vlgmr.msra.gmra.mxu0 %v1491_v58  ;;  %v4598_v58 = vld [vmem:[#allocation6 + $0x7e4] sm:$0xf]  ;;  %v4002_v59 = vld [vmem:[#allocation6 + $0x7e8] sm:$0xf0] }
 0x371   :  { %2244 = vmatpush.bf16.msra.mxu1 %v4013_v57  ;;  %v4005_v1 = vor.u32 %v4598_v58, %v4002_v59  ;;  %2205 = vmatpush.bf16.msrb.mxu2 %v3945_v2  ;;  %v3922_v57 = vld [vmem:[#allocation6 + $0x748] sm:$0xf0]  ;;  %v3968_v58 = vld [vmem:[#allocation6 + $0x7a0] sm:$0xf]  ;;  %v4591_v59 = vld [vmem:[#allocation6 + $0x7a4] sm:$0xf0] }
 0x372   :  { %2231 = vmatpush.bf16.msra.mxu0 %v3949_v3  ;;  %2219 = vmatpush.bf16.msrb.mxu3 %v4001_v61  ;;  %v3925_v60 = vor.u32 %v4578_v55, %v3922_v57  ;;  %v3969_v61 = vor.u32 %v4591_v59, %v3968_v58  ;;  %v4577_v2 = vld [vmem:[#allocation6 + $0x734] sm:$0xf0]  ;;  %v4576_v3 = vld [vmem:[#allocation6 + $0x734] sm:$0xf]  ;;  %v4120_v55 = vld [vmem:[#allocation6 + $0x8d0] sm:$0xf] }
 0x373   :  { %v3917_v6 = vor.u32 %v4576_v3, %v3914_v5  ;;  %v4628_v57 = vld [vmem:[#allocation6 + $0x8d4] sm:$0xf]  ;;  %v4122_v58 = vld [vmem:[#allocation6 + $0x8d8] sm:$0xf0]  ;;  %v4064_v59 = vld [vmem:[#allocation6 + $0x860] sm:$0xf] }
 0x374   :  { %v4627_v3 = vld [vmem:[#allocation6 + $0x8c4] sm:$0xf0]  ;;  %v4056_v5 = vld [vmem:[#allocation6 + $0x850] sm:$0xf] }
 0x375   :  { %2245 = vmatpush.bf16.msra.mxu1 %v4005_v1  ;;  %2206 = vmatpush.bf16.msrb.mxu2 %v3937_v10  ;;  %v3912_v1 = vld [vmem:[#allocation6 + $0x730] sm:$0xf]  ;;  %v4588_v10 = vld [vmem:[#allocation6 + $0x794] sm:$0xf] }
 0x376   :  { %2232 = vmatpush.bf16.msra.mxu0 %v3941_v14  ;;  %2220 = vmatpush.bf16.msrb.mxu3 %v3993_v13  ;;  %v3913_v4 = vor.u32 %v4577_v2, %v3912_v1  ;;  %v3965_v12 = vor.u32 %v4588_v10, %v3962_v11  ;;  %v3904_v13 = vld [vmem:[#allocation6 + $0x720] sm:$0xf]  ;;  %v4575_v14 = vld [vmem:[#allocation6 + $0x724] sm:$0xf0]  ;;  %v4069_v1 = vor.u32 %v4614_v62, %v4066_v63  ;;  %v4058_v10 = vld [vmem:[#allocation6 + $0x858] sm:$0xf0] }
 0x377   :  { %v3905_v16 = vor.u32 %v4575_v14, %v3904_v13  ;;  %v4112_v2 = vld [vmem:[#allocation6 + $0x8c0] sm:$0xf]  ;;  %v1783_v14 = vld [vmem:[#allocation7 + $0xc] sm:$0x3]  ;;  %v4090_v62 = vld [vmem:[#allocation6 + $0x898] sm:$0xf0] }
 0x379   :  { %2246 = vmatpush.bf16.msra.mxu1 %v3997_v17  ;;  %2207 = vmatpush.bf16.msrb.mxu2 %v3929_v24  ;;  %v3906_v17 = vld [vmem:[#allocation6 + $0x728] sm:$0xf0]  ;;  %v3957_v24 = vor.u32 %v4586_v21, %v3954_v23  ;;  %v1785_v23 = vperm.slane %v1783_v14, 0 }
 0x37a   :  { %2233 = vmatpush.bf16.msra.mxu0 %v3933_v25  ;;  %2221 = vmatpush.bf16.msrb.mxu3 %v3985_v28  ;;  %v3909_v18 = vor.u32 %v4574_v15, %v3906_v17  ;;  %v3896_v25 = vld [vmem:[#allocation6 + $0x710] sm:$0xf]  ;;  %v4572_v28 = vld [vmem:[#allocation6 + $0x714] sm:$0xf]  ;;  %v4113_v15 = vor.u32 %v4627_v3, %v4112_v2  ;;  %v1786_v17 = vperm.slane %v1783_v14, 1 }
 0x37b   :  { %v4606_v2 = vld [vmem:[#allocation6 + $0x824] sm:$0xf] }
 0x37d   :  { %2247 = vmatpush.bf16.msra.mxu1 %v3989_v29  ;;  %2208 = vmatpush.bf16.msrb.mxu2 %v3921_v56  ;;  %v3898_v29 = vld [vmem:[#allocation6 + $0x718] sm:$0xf0]  ;;  %v4629_v56 = vld [vmem:[#allocation6 + $0x8d4] sm:$0xf0] }
 0x37e   :  { %2222 = vmatpush.bf16.msrb.mxu3 %v3977_v50  ;;  %2234 = vmatpush.bf16.msra.mxu0 %v3925_v60  ;;  %v4616_v50 = vld [vmem:[#allocation6 + $0x874] sm:$0xf]  ;;  %v4615_v60 = vld [vmem:[#allocation6 + $0x864] sm:$0xf0] }
 0x37f   :  { %v4077_v54 = vor.u32 %v4616_v50, %v4074_v51  ;;  %v4098_v50 = vld [vmem:[#allocation6 + $0x8a8] sm:$0xf0] }
 0x380   :  { %v4101_v51 = vor.u32 %v4622_v49, %v4098_v50  ;;  %v4646_v49 = vld [vmem:[#allocation6 + $0x964] sm:$0xf]  ;;  %v4194_v50 = vld [vmem:[#allocation6 + $0x968] sm:$0xf0] }
 0x381   :  { %2248 = vmatpush.bf16.msra.mxu1 %v3981_v52  ;;  %2209 = vmatpush.bf16.msrb.mxu2 %v3913_v4  ;;  %v4125_v4 = vor.u32 %v4628_v57, %v4122_v58  ;;  %v4088_v58 = vld [vmem:[#allocation6 + $0x890] sm:$0xf] }
 0x382   :  { %2223 = vmatpush.bf16.msrb.mxu3 %v3969_v61  ;;  %2235 = vmatpush.bf16.msra.mxu0 %v3917_v6  ;;  %v4065_v61 = vor.u32 %v4615_v60, %v4064_v59  ;;  %v4613_v6 = vld [vmem:[#allocation6 + $0x854] sm:$0xf0] }
 0x383   :  { %v4057_v11 = vor.u32 %v4613_v6, %v4056_v5  ;;  %v4621_v59 = vld [vmem:[#allocation6 + $0x894] sm:$0xf0]  ;;  %v4080_v6 = vld [vmem:[#allocation6 + $0x880] sm:$0xf] }
 0x384   :  { %v4089_v60 = vor.u32 %v4621_v59, %v4088_v58  ;;  %v4644_v58 = vld [vmem:[#allocation6 + $0x954] sm:$0xf]  ;;  %v4658_v59 = vld [vmem:[#allocation6 + $0x9c4] sm:$0xf] }
 0x385   :  { %2249 = vmatpush.bf16.msra.mxu1 %v3973_v0  ;;  %2210 = vmatpush.bf16.msrb.mxu2 %v3905_v16  ;;  %v4121_v0 = vor.u32 %v4629_v56, %v4120_v55  ;;  %v4042_v56 = vld [vmem:[#allocation6 + $0x838] sm:$0xf0] }
 0x386   :  { %2224 = vmatpush.bf16.msrb.mxu3 %v3961_v9  ;;  %2236 = vmatpush.bf16.msra.mxu0 %v3909_v18  ;;  %v4114_v9 = vld [vmem:[#allocation6 + $0x8c8] sm:$0xf0] }
 0x387   :  { %v4117_v16 = vor.u32 %v4626_v8, %v4114_v9  ;;  %v4618_v8 = vld [vmem:[#allocation6 + $0x884] sm:$0xf] }
 0x389   :  { %2250 = vmatpush.bf16.msra.mxu1 %v3965_v12  ;;  %v4061_v12 = vor.u32 %v4612_v7, %v4058_v10  ;;  %v4619_v7 = vld [vmem:[#allocation6 + $0x884] sm:$0xf0]  ;;  %v4082_v10 = vld [vmem:[#allocation6 + $0x888] sm:$0xf0] }
 0x38a   :  { %2225 = vmatpush.bf16.msrb.mxu3 %v3953_v22  ;;  %v4081_v9 = vor.u32 %v4619_v7, %v4080_v6 }
 0x38d   :  { %2251 = vmatpush.bf16.msra.mxu1 %v3957_v24 }
 0x3e7   :  { %v1741_v26 = vpop.f32.mrf.mxu1 }
 0x3ed   :  { %v1715_v31 = vpop.f32.mrf.mxu3  ;;  %v1728_v32 = vpop.f32.mrf.mxu0 }
 0x3ee   :  { %v1729_v33 = vadd.f32 %v1728_v32, %v1530_v30  ;;  %v3901_v30 = vor.u32 %v4572_v28, %v3898_v29  ;;  %v4571_v32 = vld [vmem:[#allocation6 + $0x704] sm:$0xf0] }
 0x3ef   :  { %v1743_v34 = vpop.f32.mrf.mxu1 }
 0x3f0   :  { %v1742_v35 = vadd.f32 %v1741_v26, %v1729_v33  ;;  %v4573_v26 = vld [vmem:[#allocation6 + $0x714] sm:$0xf0]  ;;  %2237 = vmatpush.bf16.msra.mxu0 %v3901_v30  ;;  %v4570_v33 = vld [vmem:[#allocation6 + $0x704] sm:$0xf] }
 0x3f1   :  { %v3897_v27 = vor.u32 %v4573_v26, %v3896_v25 }
 0x3f2   :  { %v1746_v37 = vmax.f32 %v1742_v35, 0.0  ;;  %v3890_v35 = vld [vmem:[#allocation6 + $0x708] sm:$0xf0] }
 0x3f3   :  { %v1702_v38 = vpop.f32.mrf.mxu2  ;;  %2211 = vmatpush.bf16.msrb.mxu2 %v3897_v27 }
 0x3f4   :  { %v1748_v39 = vpack.c.bf16 %v1746_v37, %v1746_v37  ;;  %v1703_v40 = vadd.f32 %v1702_v38, %v1529_v36  ;;  %v3893_v36 = vor.u32 %v4570_v33, %v3890_v35  ;;  %v4136_v37 = vld [vmem:[#allocation6 + $0x8f0] sm:$0xf]  ;;  %v4633_v38 = vld [vmem:[#allocation6 + $0x8f4] sm:$0xf0] }
 0x3f5   :  { %v1717_v41 = vpop.f32.mrf.mxu3  ;;  %v1730_v42 = vpop.f32.mrf.mxu0  ;;  %v4625_v35 = vld [vmem:[#allocation6 + $0x8b4] sm:$0xf0] }
 0x3f6   :  { %v1716_v43 = vadd.f32 %v1715_v31, %v1703_v40  ;;  %1970 = vmatmul.bf16.vlgmr.msra.gmra.mxu3 %v1748_v39  ;;  %1996 = vmatmul.bf16.vlgmr.msrb.gmra.mxu1 %v1748_v39  ;;  %v3888_v31 = vld [vmem:[#allocation6 + $0x700] sm:$0xf]  ;;  %v4632_v39 = vld [vmem:[#allocation6 + $0x8f4] sm:$0xf]  ;;  %v4137_v40 = vor.u32 %v4633_v38, %v4136_v37  ;;  %v4138_v41 = vld [vmem:[#allocation6 + $0x8f8] sm:$0xf0] }
 0x3f7   :  { %v3889_v34 = vor.u32 %v4571_v32, %v3888_v31  ;;  %2238 = vmatpush.bf16.msra.mxu0 %v3893_v36  ;;  %v4128_v42 = vld [vmem:[#allocation6 + $0x8e0] sm:$0xf]  ;;  %v4624_v36 = vld [vmem:[#allocation6 + $0x8b4] sm:$0xf]  ;;  %v4106_v38 = vld [vmem:[#allocation6 + $0x8b8] sm:$0xf0] }
 0x3f8   :  { %v1745_v44 = vmax.f32 %v1716_v43, 0.0  ;;  %v4631_v43 = vld [vmem:[#allocation6 + $0x8e4] sm:$0xf0]  ;;  %2474 = vmatpush.bf16.msra.mxu3 %v4137_v40  ;;  %v4048_v40 = vld [vmem:[#allocation6 + $0x840] sm:$0xf] }
 0x3f9   :  { %2212 = vmatpush.bf16.msrb.mxu2 %v3889_v34  ;;  %v4129_v48 = vor.u32 %v4631_v43, %v4128_v42  ;;  %v4104_v34 = vld [vmem:[#allocation6 + $0x8b0] sm:$0xf]  ;;  %v4610_v42 = vld [vmem:[#allocation6 + $0x844] sm:$0xf] }
 0x3fa   :  { %v1747_v45 = vpack.c.bf16 %v1745_v44, %v1745_v44  ;;  %v4141_v44 = vor.u32 %v4632_v39, %v4138_v41  ;;  %v4105_v37 = vor.u32 %v4625_v35, %v4104_v34  ;;  %v4109_v39 = vor.u32 %v4624_v36, %v4106_v38  ;;  %v4611_v41 = vld [vmem:[#allocation6 + $0x844] sm:$0xf0]  ;;  %v4200_v34 = vld [vmem:[#allocation6 + $0x970] sm:$0xf]  ;;  %v4649_v36 = vld [vmem:[#allocation6 + $0x974] sm:$0xf0] }
 0x3fb   :  { %v1704_v46 = vpop.f32.mrf.mxu2  ;;  %v4049_v43 = vor.u32 %v4611_v41, %v4048_v40  ;;  %v4202_v38 = vld [vmem:[#allocation6 + $0x978] sm:$0xf0]  ;;  %v4201_v40 = vor.u32 %v4649_v36, %v4200_v34  ;;  %v4654_v36 = vld [vmem:[#allocation6 + $0x9a4] sm:$0xf] }
 0x3fc   :  { %1957 = vmatmul.bf16.vlgmr.msra.gmra.mxu2 %v1747_v45  ;;  %1983 = vmatmul.bf16.vlgmr.msrb.gmra.mxu0 %v1747_v45  ;;  %v4630_v45 = vld [vmem:[#allocation6 + $0x8e4] sm:$0xf]  ;;  %v4130_v46 = vld [vmem:[#allocation6 + $0x8e8] sm:$0xf0] }
 0x3fd   :  { %2500 = vmatpush.bf16.msrb.mxu1 %v4141_v44  ;;  %v4133_v52 = vor.u32 %v4630_v45, %v4130_v46  ;;  %2461 = vmatpush.bf16.msra.mxu2 %v4073_v53  ;;  %v4050_v44 = vld [vmem:[#allocation6 + $0x848] sm:$0xf0]  ;;  %v4096_v45 = vld [vmem:[#allocation6 + $0x8a0] sm:$0xf]  ;;  %v4623_v46 = vld [vmem:[#allocation6 + $0x8a4] sm:$0xf0] }
 0x3fe   :  { %2487 = vmatpush.bf16.msrb.mxu0 %v4077_v54  ;;  %2475 = vmatpush.bf16.msra.mxu3 %v4129_v48  ;;  %v4053_v47 = vor.u32 %v4610_v42, %v4050_v44  ;;  %v4097_v48 = vor.u32 %v4623_v46, %v4096_v45  ;;  %v4609_v53 = vld [vmem:[#allocation6 + $0x834] sm:$0xf0]  ;;  %v4608_v54 = vld [vmem:[#allocation6 + $0x834] sm:$0xf]  ;;  %v4248_v42 = vld [vmem:[#allocation6 + $0x9d0] sm:$0xf] }
 0x3ff   :  { %v4045_v57 = vor.u32 %v4608_v54, %v4042_v56  ;;  %v4660_v44 = vld [vmem:[#allocation6 + $0x9d4] sm:$0xf]  ;;  %v4250_v45 = vld [vmem:[#allocation6 + $0x9d8] sm:$0xf0]  ;;  %v4192_v46 = vld [vmem:[#allocation6 + $0x960] sm:$0xf] }
 0x400   :  { %v4659_v54 = vld [vmem:[#allocation6 + $0x9c4] sm:$0xf0]  ;;  %v4184_v56 = vld [vmem:[#allocation6 + $0x950] sm:$0xf] }
 0x401   :  { %2501 = vmatpush.bf16.msrb.mxu1 %v4133_v52  ;;  %2462 = vmatpush.bf16.msra.mxu2 %v4065_v61  ;;  %v4040_v52 = vld [vmem:[#allocation6 + $0x830] sm:$0xf]  ;;  %v4620_v61 = vld [vmem:[#allocation6 + $0x894] sm:$0xf] }
 0x402   :  { %2488 = vmatpush.bf16.msrb.mxu0 %v4069_v1  ;;  %2476 = vmatpush.bf16.msra.mxu3 %v4121_v0  ;;  %v4041_v55 = vor.u32 %v4609_v53, %v4040_v52  ;;  %v4093_v63 = vor.u32 %v4620_v61, %v4090_v62  ;;  %v4032_v0 = vld [vmem:[#allocation6 + $0x820] sm:$0xf]  ;;  %v4607_v1 = vld [vmem:[#allocation6 + $0x824] sm:$0xf0]  ;;  %v4197_v52 = vor.u32 %v4646_v49, %v4194_v50  ;;  %v4186_v61 = vld [vmem:[#allocation6 + $0x958] sm:$0xf0] }
 0x403   :  { %v4033_v3 = vor.u32 %v4607_v1, %v4032_v0  ;;  %v4240_v53 = vld [vmem:[#allocation6 + $0x9c0] sm:$0xf]  ;;  %v2039_v1 = vld [vmem:[#allocation7 + $0xe] sm:$0x3]  ;;  %v4218_v49 = vld [vmem:[#allocation6 + $0x998] sm:$0xf0] }
 0x405   :  { %2502 = vmatpush.bf16.msrb.mxu1 %v4125_v4  ;;  %2463 = vmatpush.bf16.msra.mxu2 %v4057_v11  ;;  %v4034_v4 = vld [vmem:[#allocation6 + $0x828] sm:$0xf0]  ;;  %v4085_v11 = vor.u32 %v4618_v8, %v4082_v10  ;;  %v2041_v10 = vperm.slane %v2039_v1, 0 }
 0x406   :  { %2489 = vmatpush.bf16.msrb.mxu0 %v4061_v12  ;;  %2477 = vmatpush.bf16.msra.mxu3 %v4113_v15  ;;  %v4037_v5 = vor.u32 %v4606_v2, %v4034_v4  ;;  %v4024_v12 = vld [vmem:[#allocation6 + $0x810] sm:$0xf]  ;;  %v4604_v15 = vld [vmem:[#allocation6 + $0x814] sm:$0xf]  ;;  %v4241_v2 = vor.u32 %v4659_v54, %v4240_v53  ;;  %v2042_v4 = vperm.slane %v2039_v1, 1 }
 0x407   :  { %v4638_v53 = vld [vmem:[#allocation6 + $0x924] sm:$0xf] }
 0x409   :  { %2503 = vmatpush.bf16.msrb.mxu1 %v4117_v16  ;;  %2464 = vmatpush.bf16.msra.mxu2 %v4049_v43  ;;  %v4026_v16 = vld [vmem:[#allocation6 + $0x818] sm:$0xf0]  ;;  %v4661_v43 = vld [vmem:[#allocation6 + $0x9d4] sm:$0xf0] }
 0x40a   :  { %2478 = vmatpush.bf16.msra.mxu3 %v4105_v37  ;;  %2490 = vmatpush.bf16.msrb.mxu0 %v4053_v47  ;;  %v4648_v37 = vld [vmem:[#allocation6 + $0x974] sm:$0xf]  ;;  %v4647_v47 = vld [vmem:[#allocation6 + $0x964] sm:$0xf0] }
 0x40b   :  { %v4205_v41 = vor.u32 %v4648_v37, %v4202_v38  ;;  %v4226_v37 = vld [vmem:[#allocation6 + $0x9a8] sm:$0xf0] }
 0x40c   :  { %v4229_v38 = vor.u32 %v4654_v36, %v4226_v37  ;;  %v4677_v37 = vld [vmem:[%s4943_s5 + $0x58] sm:$0xff] }
 0x40d   :  { %2504 = vmatpush.bf16.msrb.mxu1 %v4109_v39  ;;  %2465 = vmatpush.bf16.msra.mxu2 %v4041_v55  ;;  %v4253_v55 = vor.u32 %v4660_v44, %v4250_v45  ;;  %v4216_v45 = vld [vmem:[#allocation6 + $0x990] sm:$0xf] }
 0x40e   :  { %2479 = vmatpush.bf16.msra.mxu3 %v4097_v48  ;;  %2491 = vmatpush.bf16.msrb.mxu0 %v4045_v57  ;;  %v4193_v48 = vor.u32 %v4647_v47, %v4192_v46  ;;  %v4645_v57 = vld [vmem:[#allocation6 + $0x954] sm:$0xf0] }
 0x40f   :  { %v4185_v62 = vor.u32 %v4645_v57, %v4184_v56  ;;  %v4653_v46 = vld [vmem:[#allocation6 + $0x994] sm:$0xf0]  ;;  %v4208_v57 = vld [vmem:[#allocation6 + $0x980] sm:$0xf] }
 0x410   :  { %v4217_v47 = vor.u32 %v4653_v46, %v4216_v45  ;;  %v4666_v45 = vld [vmem:[%s4943_s5] sm:$0xff] }
 0x411   :  { %2505 = vmatpush.bf16.msrb.mxu1 %v4101_v51  ;;  %2466 = vmatpush.bf16.msra.mxu2 %v4033_v3  ;;  %v4249_v51 = vor.u32 %v4661_v43, %v4248_v42  ;;  %v4170_v43 = vld [vmem:[#allocation6 + $0x938] sm:$0xf0] }
 0x412   :  { %2480 = vmatpush.bf16.msra.mxu3 %v4089_v60  ;;  %2492 = vmatpush.bf16.msrb.mxu0 %v4037_v5  ;;  %v4242_v60 = vld [vmem:[#allocation6 + $0x9c8] sm:$0xf0] }
 0x413   :  { %v4245_v3 = vor.u32 %v4658_v59, %v4242_v60  ;;  %v4650_v59 = vld [vmem:[#allocation6 + $0x984] sm:$0xf] }
 0x415   :  { %2506 = vmatpush.bf16.msrb.mxu1 %v4093_v63  ;;  %v4189_v63 = vor.u32 %v4644_v58, %v4186_v61  ;;  %v4651_v58 = vld [vmem:[#allocation6 + $0x984] sm:$0xf0]  ;;  %v4210_v61 = vld [vmem:[#allocation6 + $0x988] sm:$0xf0] }
 0x416   :  { %2481 = vmatpush.bf16.msra.mxu3 %v4081_v9  ;;  %v4209_v60 = vor.u32 %v4651_v58, %v4208_v57 }
 0x419   :  { %2507 = vmatpush.bf16.msrb.mxu1 %v4085_v11 }
 0x473   :  { %v1997_v13 = vpop.f32.mrf.mxu1 }
 0x479   :  { %v1971_v18 = vpop.f32.mrf.mxu3  ;;  %v1984_v19 = vpop.f32.mrf.mxu0 }
 0x47a   :  { %v1985_v20 = vadd.f32 %v1984_v19, %v1786_v17  ;;  %v4029_v17 = vor.u32 %v4604_v15, %v4026_v16  ;;  %v4603_v19 = vld [vmem:[#allocation6 + $0x804] sm:$0xf0] }
 0x47b   :  { %v1999_v21 = vpop.f32.mrf.mxu1 }
 0x47c   :  { %v1998_v22 = vadd.f32 %v1997_v13, %v1985_v20  ;;  %v4605_v13 = vld [vmem:[#allocation6 + $0x814] sm:$0xf0]  ;;  %2493 = vmatpush.bf16.msrb.mxu0 %v4029_v17  ;;  %v4602_v20 = vld [vmem:[#allocation6 + $0x804] sm:$0xf] }
 0x47d   :  { %v4025_v14 = vor.u32 %v4605_v13, %v4024_v12 }
 0x47e   :  { %v2002_v24 = vmax.f32 %v1998_v22, 0.0  ;;  %v4018_v22 = vld [vmem:[#allocation6 + $0x808] sm:$0xf0] }
 0x47f   :  { %v1958_v25 = vpop.f32.mrf.mxu2  ;;  %2467 = vmatpush.bf16.msra.mxu2 %v4025_v14 }
 0x480   :  { %v2004_v26 = vpack.c.bf16 %v2002_v24, %v2002_v24  ;;  %v1959_v27 = vadd.f32 %v1958_v25, %v1785_v23  ;;  %v4021_v23 = vor.u32 %v4602_v20, %v4018_v22  ;;  %v4264_v24 = vld [vmem:[#allocation6 + $0x9f0] sm:$0xf]  ;;  %v4665_v25 = vld [vmem:[#allocation6 + $0x9f4] sm:$0xf0] }
 0x481   :  { %v1973_v28 = vpop.f32.mrf.mxu3  ;;  %v1986_v29 = vpop.f32.mrf.mxu0  ;;  %v4657_v22 = vld [vmem:[#allocation6 + $0x9b4] sm:$0xf0] }
 0x482   :  { %v1972_v30 = vadd.f32 %v1971_v18, %v1959_v27  ;;  %2226 = vmatmul.bf16.vlgmr.msrb.gmra.mxu3 %v2004_v26  ;;  %2252 = vmatmul.bf16.vlgmr.msra.gmra.mxu1 %v2004_v26  ;;  %v4016_v18 = vld [vmem:[#allocation6 + $0x800] sm:$0xf]  ;;  %v4664_v26 = vld [vmem:[#allocation6 + $0x9f4] sm:$0xf]  ;;  %v4265_v27 = vor.u32 %v4665_v25, %v4264_v24  ;;  %v4266_v28 = vld [vmem:[#allocation6 + $0x9f8] sm:$0xf0] }
 0x483   :  { %v4017_v21 = vor.u32 %v4603_v19, %v4016_v18  ;;  %2494 = vmatpush.bf16.msrb.mxu0 %v4021_v23  ;;  %v4256_v29 = vld [vmem:[#allocation6 + $0x9e0] sm:$0xf]  ;;  %v4656_v23 = vld [vmem:[#allocation6 + $0x9b4] sm:$0xf]  ;;  %v4234_v25 = vld [vmem:[#allocation6 + $0x9b8] sm:$0xf0] }
 0x484   :  { %v2001_v31 = vmax.f32 %v1972_v30, 0.0  ;;  %v4663_v30 = vld [vmem:[#allocation6 + $0x9e4] sm:$0xf0]  ;;  %2730 = vmatpush.bf16.msrb.mxu3 %v4265_v27  ;;  %v4176_v27 = vld [vmem:[#allocation6 + $0x940] sm:$0xf] }
 0x485   :  { %2468 = vmatpush.bf16.msra.mxu2 %v4017_v21  ;;  %v4257_v35 = vor.u32 %v4663_v30, %v4256_v29  ;;  %v4232_v21 = vld [vmem:[#allocation6 + $0x9b0] sm:$0xf]  ;;  %v4642_v29 = vld [vmem:[#allocation6 + $0x944] sm:$0xf] }
 0x486   :  { %v2003_v32 = vpack.c.bf16 %v2001_v31, %v2001_v31  ;;  %v4269_v31 = vor.u32 %v4664_v26, %v4266_v28  ;;  %v4233_v24 = vor.u32 %v4657_v22, %v4232_v21  ;;  %v4237_v26 = vor.u32 %v4656_v23, %v4234_v25  ;;  %v4643_v28 = vld [vmem:[#allocation6 + $0x944] sm:$0xf0] }
 0x487   :  { %v1960_v33 = vpop.f32.mrf.mxu2  ;;  %v4177_v30 = vor.u32 %v4643_v28, %v4176_v27 }
 0x488   :  { %2213 = vmatmul.bf16.vlgmr.msrb.gmra.mxu2 %v2003_v32  ;;  %2239 = vmatmul.bf16.vlgmr.msra.gmra.mxu0 %v2003_v32  ;;  %v4662_v32 = vld [vmem:[#allocation6 + $0x9e4] sm:$0xf]  ;;  %v4258_v33 = vld [vmem:[#allocation6 + $0x9e8] sm:$0xf0] }
 0x489   :  { %2756 = vmatpush.bf16.msra.mxu1 %v4269_v31  ;;  %v4261_v39 = vor.u32 %v4662_v32, %v4258_v33  ;;  %2717 = vmatpush.bf16.msrb.mxu2 %v4201_v40  ;;  %v4178_v31 = vld [vmem:[#allocation6 + $0x948] sm:$0xf0]  ;;  %v4224_v32 = vld [vmem:[#allocation6 + $0x9a0] sm:$0xf]  ;;  %v4655_v33 = vld [vmem:[#allocation6 + $0x9a4] sm:$0xf0] }
 0x48a   :  { %2743 = vmatpush.bf16.msra.mxu0 %v4205_v41  ;;  %2731 = vmatpush.bf16.msrb.mxu3 %v4257_v35  ;;  %v4181_v34 = vor.u32 %v4642_v29, %v4178_v31  ;;  %v4225_v35 = vor.u32 %v4655_v33, %v4224_v32  ;;  %v4641_v40 = vld [vmem:[#allocation6 + $0x934] sm:$0xf0]  ;;  %v4640_v41 = vld [vmem:[#allocation6 + $0x934] sm:$0xf] }
 0x48b   :  { %v4173_v44 = vor.u32 %v4640_v41, %v4170_v43  ;;  %v4675_v41 = vld [vmem:[%s4943_s5 + $0x48] sm:$0xff]  ;;  %v4674_v43 = vld [vmem:[%s4943_s5 + $0x40] sm:$0xff] }
 0x48d   :  { %2757 = vmatpush.bf16.msra.mxu1 %v4261_v39  ;;  %2718 = vmatpush.bf16.msrb.mxu2 %v4193_v48  ;;  %v4168_v39 = vld [vmem:[#allocation6 + $0x930] sm:$0xf]  ;;  %v4652_v48 = vld [vmem:[#allocation6 + $0x994] sm:$0xf] }
 0x48e   :  { %2744 = vmatpush.bf16.msra.mxu0 %v4197_v52  ;;  %2732 = vmatpush.bf16.msrb.mxu3 %v4249_v51  ;;  %v4169_v42 = vor.u32 %v4641_v40, %v4168_v39  ;;  %v4221_v50 = vor.u32 %v4652_v48, %v4218_v49  ;;  %v4160_v51 = vld [vmem:[#allocation6 + $0x920] sm:$0xf]  ;;  %v4639_v52 = vld [vmem:[#allocation6 + $0x924] sm:$0xf0]  ;;  %v4676_v39 = vld [vmem:[%s4943_s5 + $0x50] sm:$0xff] }
 0x48f   :  { %v4161_v54 = vor.u32 %v4639_v52, %v4160_v51  ;;  %v4669_v40 = vld [vmem:[%s4943_s5 + $0x18] sm:$0xff] }
 0x491   :  { %2758 = vmatpush.bf16.msra.mxu1 %v4253_v55  ;;  %2719 = vmatpush.bf16.msrb.mxu2 %v4185_v62  ;;  %v4162_v55 = vld [vmem:[#allocation6 + $0x928] sm:$0xf0]  ;;  %v4213_v62 = vor.u32 %v4650_v59, %v4210_v61 }
 0x492   :  { %2745 = vmatpush.bf16.msra.mxu0 %v4189_v63  ;;  %2733 = vmatpush.bf16.msrb.mxu3 %v4241_v2  ;;  %v4165_v56 = vor.u32 %v4638_v53, %v4162_v55  ;;  %v4152_v63 = vld [vmem:[#allocation6 + $0x910] sm:$0xf]  ;;  %v4636_v2 = vld [vmem:[#allocation6 + $0x914] sm:$0xf] }
 0x495   :  { %2759 = vmatpush.bf16.msra.mxu1 %v4245_v3  ;;  %2720 = vmatpush.bf16.msrb.mxu2 %v4177_v30  ;;  %v4154_v3 = vld [vmem:[#allocation6 + $0x918] sm:$0xf0] }
 0x496   :  { %2734 = vmatpush.bf16.msrb.mxu3 %v4233_v24  ;;  %2746 = vmatpush.bf16.msra.mxu0 %v4181_v34 }
 0x499   :  { %2760 = vmatpush.bf16.msra.mxu1 %v4237_v26  ;;  %2721 = vmatpush.bf16.msrb.mxu2 %v4169_v42  ;;  %v4668_v42 = vld [vmem:[%s4943_s5 + $0x10] sm:$0xff] }
 0x49a   :  { %2735 = vmatpush.bf16.msrb.mxu3 %v4225_v35  ;;  %2747 = vmatpush.bf16.msra.mxu0 %v4173_v44  ;;  %v4667_v44 = vld [vmem:[%s4943_s5 + $0x8] sm:$0xff] }
 0x49d   :  { %2761 = vmatpush.bf16.msra.mxu1 %v4229_v38  ;;  %2722 = vmatpush.bf16.msrb.mxu2 %v4161_v54  ;;  %v4670_v38 = vld [vmem:[%s4943_s5 + $0x20] sm:$0xff] }
 0x49e   :  { %2736 = vmatpush.bf16.msrb.mxu3 %v4217_v47  ;;  %2748 = vmatpush.bf16.msra.mxu0 %v4165_v56  ;;  %v2551_v47 = vld [vmem:[#allocation7 + $0x12] sm:$0x3] }
 0x49f   :  { %v2554_v48 = vperm.slane %v2551_v47, 1  ;;  %v2553_v54 = vperm.slane %v2551_v47, 0 }
 0x4a1   :  { %2762 = vmatpush.bf16.msra.mxu1 %v4221_v50 }
 0x4a2   :  { %2737 = vmatpush.bf16.msrb.mxu3 %v4209_v60 }
 0x4a5   :  { %2763 = vmatpush.bf16.msra.mxu1 %v4213_v62 }
 0x4ff   :  { %v2253_v0 = vpop.f32.mrf.mxu1 }
 0x505   :  { %v2227_v5 = vpop.f32.mrf.mxu3  ;;  %v2240_v6 = vpop.f32.mrf.mxu0 }
 0x506   :  { %v2241_v7 = vadd.f32 %v2240_v6, %v2042_v4  ;;  %v4157_v4 = vor.u32 %v4636_v2, %v4154_v3  ;;  %v4635_v6 = vld [vmem:[#allocation6 + $0x904] sm:$0xf0]  ;;  %v4691_v2 = vld [vmem:[#allocation9] ss:$0 sm:$0xff] }
 0x507   :  { %v2255_v8 = vpop.f32.mrf.mxu1 }
 0x508   :  { %v2254_v9 = vadd.f32 %v2253_v0, %v2241_v7  ;;  %v4637_v0 = vld [vmem:[#allocation6 + $0x914] sm:$0xf0]  ;;  %2749 = vmatpush.bf16.msra.mxu0 %v4157_v4  ;;  %v4634_v7 = vld [vmem:[#allocation6 + $0x904] sm:$0xf] }
 0x509   :  { %v4153_v1 = vor.u32 %v4637_v0, %v4152_v63 }
 0x50a   :  { %v2258_v11 = vmax.f32 %v2254_v9, 0.0  ;;  %v4146_v9 = vld [vmem:[#allocation6 + $0x908] sm:$0xf0] }
 0x50b   :  { %v2214_v12 = vpop.f32.mrf.mxu2  ;;  %2723 = vmatpush.bf16.msrb.mxu2 %v4153_v1 }
 0x50c   :  { %v2260_v13 = vpack.c.bf16 %v2258_v11, %v2258_v11  ;;  %v2215_v14 = vadd.f32 %v2214_v12, %v2041_v10  ;;  %v4149_v10 = vor.u32 %v4634_v7, %v4146_v9  ;;  %v4681_v11 = vld [vmem:[%s4943_s5 + $0x78] sm:$0xff] }
 0x50d   :  { %v2229_v15 = vpop.f32.mrf.mxu3  ;;  %v2242_v16 = vpop.f32.mrf.mxu0  ;;  %v4673_v12 = vld [vmem:[%s4943_s5 + $0x38] sm:$0xff] }
 0x50e   :  { %v2228_v17 = vadd.f32 %v2227_v5, %v2215_v14  ;;  %2482 = vmatmul.bf16.vlgmr.msra.gmra.mxu3 %v2260_v13  ;;  %2508 = vmatmul.bf16.vlgmr.msrb.gmra.mxu1 %v2260_v13  ;;  %v4144_v5 = vld [vmem:[#allocation6 + $0x900] sm:$0xf]  ;;  %v4680_v13 = vld [vmem:[%s4943_s5 + $0x70] sm:$0xff]  ;;  %v4679_v15 = vld [vmem:[%s4943_s5 + $0x68] sm:$0xff] }
 0x50f   :  { %v4145_v8 = vor.u32 %v4635_v6, %v4144_v5  ;;  %2750 = vmatpush.bf16.msra.mxu0 %v4149_v10  ;;  %2918 = vmatpush.bf16.msra.mxu3 %v4681_v11  ;;  %v4672_v14 = vld [vmem:[%s4943_s5 + $0x30] sm:$0xff]  ;;  %v4671_v16 = vld [vmem:[%s4943_s5 + $0x28] sm:$0xff] }
 0x510   :  { %v2257_v18 = vmax.f32 %v2228_v17, 0.0  ;;  %v4678_v17 = vld [vmem:[%s4943_s5 + $0x60] sm:$0xff] }
 0x511   :  { %2724 = vmatpush.bf16.msrb.mxu2 %v4145_v8 }
 0x512   :  { %v2259_v19 = vpack.c.bf16 %v2257_v18, %v2257_v18 }
 0x513   :  { %v2216_v20 = vpop.f32.mrf.mxu2  ;;  %2919 = vmatpush.bf16.msra.mxu3 %v4680_v13 }
 0x514   :  { %2469 = vmatmul.bf16.vlgmr.msra.gmra.mxu2 %v2259_v19  ;;  %2495 = vmatmul.bf16.vlgmr.msrb.gmra.mxu0 %v2259_v19  ;;  %v2295_v19 = vld [vmem:[#allocation7 + $0x10] sm:$0x3] }
 0x515   :  { %2905 = vmatpush.bf16.msra.mxu2 %v4673_v12  ;;  %v2298_v20 = vperm.slane %v2295_v19, 1  ;;  %v2297_v26 = vperm.slane %v2295_v19, 0 }
 0x517   :  { %2920 = vmatpush.bf16.msra.mxu3 %v4679_v15 }
 0x519   :  { %2906 = vmatpush.bf16.msra.mxu2 %v4672_v14 }
 0x51b   :  { %2921 = vmatpush.bf16.msra.mxu3 %v4678_v17 }
 0x51d   :  { %2907 = vmatpush.bf16.msra.mxu2 %v4671_v16 }
 0x51f   :  { %2922 = vmatpush.bf16.msra.mxu3 %v4677_v37 }
 0x521   :  { %2908 = vmatpush.bf16.msra.mxu2 %v4670_v38 }
 0x523   :  { %2923 = vmatpush.bf16.msra.mxu3 %v4676_v39 }
 0x525   :  { %2909 = vmatpush.bf16.msra.mxu2 %v4669_v40 }
 0x527   :  { %2924 = vmatpush.bf16.msra.mxu3 %v4675_v41 }
 0x529   :  { %2910 = vmatpush.bf16.msra.mxu2 %v4668_v42 }
 0x52b   :  { %2925 = vmatpush.bf16.msra.mxu3 %v4674_v43 }
 0x52d   :  { %2911 = vmatpush.bf16.msra.mxu2 %v4667_v44 }
 0x531   :  { %2912 = vmatpush.bf16.msra.mxu2 %v4666_v45 }
 0x58b   :  { %v2509_v18 = vpop.f32.mrf.mxu1 }
 0x591   :  { %v2483_v21 = vpop.f32.mrf.mxu3  ;;  %v2496_v22 = vpop.f32.mrf.mxu0 }
 0x592   :  { %v2497_v23 = vadd.f32 %v2496_v22, %v2298_v20 }
 0x593   :  { %v2511_v24 = vpop.f32.mrf.mxu1 }
 0x594   :  { %v2510_v25 = vadd.f32 %v2509_v18, %v2497_v23 }
 0x596   :  { %v2514_v27 = vmax.f32 %v2510_v25, 0.0 }
 0x597   :  { %v2470_v28 = vpop.f32.mrf.mxu2 }
 0x598   :  { %v2516_v29 = vpack.c.bf16 %v2514_v27, %v2514_v27  ;;  %v2471_v30 = vadd.f32 %v2470_v28, %v2297_v26 }
 0x599   :  { %v2485_v31 = vpop.f32.mrf.mxu3  ;;  %v2498_v32 = vpop.f32.mrf.mxu0 }
 0x59a   :  { %v2484_v33 = vadd.f32 %v2483_v21, %v2471_v30  ;;  %2738 = vmatmul.bf16.vlgmr.msrb.gmra.mxu3 %v2516_v29  ;;  %2764 = vmatmul.bf16.vlgmr.msra.gmra.mxu1 %v2516_v29 }
 0x59c   :  { %v2513_v34 = vmax.f32 %v2484_v33, 0.0 }
 0x59e   :  { %v2515_v35 = vpack.c.bf16 %v2513_v34, %v2513_v34 }
 0x59f   :  { %v2472_v36 = vpop.f32.mrf.mxu2 }
 0x5a0   :  { %2725 = vmatmul.bf16.vlgmr.msrb.gmra.mxu2 %v2515_v35  ;;  %2751 = vmatmul.bf16.vlgmr.msra.gmra.mxu0 %v2515_v35 }
 0x617   :  { %v2765_v46 = vpop.f32.mrf.mxu1 }
 0x61d   :  { %v2739_v49 = vpop.f32.mrf.mxu3  ;;  %v2752_v50 = vpop.f32.mrf.mxu0 }
 0x61e   :  { %v2753_v51 = vadd.f32 %v2752_v50, %v2554_v48 }
 0x61f   :  { %v2767_v52 = vpop.f32.mrf.mxu1 }
 0x620   :  { %v2766_v53 = vadd.f32 %v2765_v46, %v2753_v51 }
 0x622   :  { %v2770_v55 = vmax.f32 %v2766_v53, 0.0 }
 0x623   :  { %v2726_v56 = vpop.f32.mrf.mxu2 }
 0x624   :  { %v2772_v57 = vpack.c.bf16 %v2770_v55, %v2770_v55  ;;  %v2727_v58 = vadd.f32 %v2726_v56, %v2553_v54 }
 0x625   :  { %v2741_v59 = vpop.f32.mrf.mxu3  ;;  %v2754_v60 = vpop.f32.mrf.mxu0 }
 0x626   :  { %v2740_v61 = vadd.f32 %v2739_v49, %v2727_v58  ;;  %2926 = vmatmul.bf16.vlgmr.msra.gmra.mxu3 %v2772_v57 }
 0x628   :  { %v2769_v62 = vmax.f32 %v2740_v61, 0.0 }
 0x62a   :  { %v2771_v63 = vpack.c.bf16 %v2769_v62, %v2769_v62 }
 0x62b   :  { %v2728_v0 = vpop.f32.mrf.mxu2 }
 0x62c   :  { %2913 = vmatmul.bf16.vlgmr.msra.gmra.mxu2 %v2771_v63 }
 0x6a9   :  { %v2927_v1 = vpop.f32.mrf.mxu3 }
 0x6af   :  { %v2914_v3 = vpop.f32.mrf.mxu2 }
 0x6b0   :  { %v2915_v4 = vadd.f32 %v4691_v2, %v2914_v3 }
 0x6b1   :  { %v2929_v5 = vpop.f32.mrf.mxu3 }
 0x6b2   :  { %v2928_v6 = vadd.f32 %v2927_v1, %v2915_v4 }
 0x6b4   :  { %2932 = vst.msk [vmem:[%s4945_s7] sm:$0xff] %vm2931_vm1, %v2928_v6 }
 0x6b7   :  { %v2916_v7 = vpop.f32.mrf.mxu2 }
 0x6b8   :  { %2937 = vsyncpa [#allocation3], 1 }
 0x6b9   :  { %2938 = vsyncpa [#allocation5], 1 }
 0x6ba   :  { %2939 = vsyncpa [#allocation8], 1 }

</bundles_post_ra>
